<compile_context>
chip_gen: v7x
topology: tpu7x:2x2x1
jax: 0.10.0
libtpu: 0.0.40
codegen_flags: <defaults>
</compile_context>

<pallas_src>
import jax
import jax.numpy as jnp
from jax.experimental import pallas as pl
from jax.experimental.pallas import tpu as pltpu

BN_EPS = 1e-5


# ---------------------------------------------------------------------------
# Pass 1: residual + 3x3 conv (fused im2col) + per-tile BN partial statistics
# ---------------------------------------------------------------------------
def _res_conv_stats_kernel(xp_ref, w_ref, y_ref, stat_ref):
    # xp_ref:   (1, Hp, Wp, C) bf16   -- replication-padded image, resident per batch
    # w_ref:    (9, C, C)      bf16   -- conv taps, tap-major (3*ki + kj, Cin, Cout)
    # y_ref:    (1, TH, W, C)  f32    -- pre-BN activation tile (x + conv)
    # stat_ref: (1, 1, 2, C)   f32    -- per-tile [sum, sum_of_squares] over rows
    _, TH, W, C = y_ref.shape
    hb = pl.program_id(1)
    h0 = pl.multiple_of(hb * TH, TH)

    # Padded window covering output rows [hb*TH, hb*TH + TH): (TH+2, Wp, C).
    win = xp_ref[0, pl.ds(h0, TH + 2), :, :]

    # Residual: the center of the padded window is exactly x for these rows.
    acc = win[1:1 + TH, 1:1 + W, :].reshape(TH * W, C).astype(jnp.float32)

    # 3x3 conv as 9 shifted accumulating matmuls (im2col fused in VMEM).
    for ki in range(3):
        for kj in range(3):
            lhs = win[ki:ki + TH, kj:kj + W, :].reshape(TH * W, C)
            acc = acc + jnp.dot(lhs, w_ref[3 * ki + kj],
                                preferred_element_type=jnp.float32)

    y_ref[...] = acc.reshape(1, TH, W, C)

    # One-pass BatchNorm partials: sum and sum of squares per output channel.
    stat_ref[0, 0, 0:1, :] = jnp.sum(acc, axis=0, keepdims=True)
    stat_ref[0, 0, 1:2, :] = jnp.sum(acc * acc, axis=0, keepdims=True)


# ---------------------------------------------------------------------------
# Pass 2: apply folded BatchNorm affine (y * scale + shift), tiled over rows
# ---------------------------------------------------------------------------
def _bn_apply_kernel(y_ref, scale_ref, shift_ref, o_ref):
    o_ref[...] = y_ref[...] * scale_ref[...] + shift_ref[...]


# ---------------------------------------------------------------------------
# Wrapper
# ---------------------------------------------------------------------------
def resblock_forward(x_nchw, w_hwio, b, gamma, beta, *, row_block=8):
    """x: (N, C, H, W); w: (3, 3, Cin, Cout) HWIO; b/gamma/beta: (Cout,)."""
    N, C, H, W = x_nchw.shape
    assert w_hwio.shape[2] == C and w_hwio.shape[3] == C, \
        "ResBlock residual add requires input_channel == output_channel"
    del b  # conv bias is exactly cancelled by the BatchNorm mean subtraction

    TH = row_block
    while H % TH:
        TH //= 2                      # largest power-of-two row block dividing H
    HB = H // TH
    Hp, Wp = H + 2, W + 2

    # NCHW -> NHWC, ReplicationPad2d(1), bf16 operands for the MXU / input DMA.
    x_nhwc = jnp.transpose(x_nchw, (0, 2, 3, 1)).astype(jnp.float32)
    xp = jnp.pad(x_nhwc, ((0, 0), (1, 1), (1, 1), (0, 0)), mode="edge")
    xp_bf = xp.astype(jnp.bfloat16)
    w_bf = w_hwio.astype(jnp.bfloat16).reshape(9, C, C)   # tap-major (3*ki + kj)

    flops = 2 * N * H * W * 9 * C * C
    bytes_accessed = (xp_bf.size * 2 + w_bf.size * 2
                      + N * H * W * C * 4 + N * HB * 2 * C * 4)

    y_pre, stats = pl.pallas_call(
        _res_conv_stats_kernel,
        grid=(N, HB),
        in_specs=[
            # Full padded image per batch element; block index ignores hb so it
            # stays resident in VMEM while the row-block axis advances.
            pl.BlockSpec((1, Hp, Wp, C), lambda n, hb: (n, 0, 0, 0)),
            pl.BlockSpec((9, C, C), lambda n, hb: (0, 0, 0)),      # weights resident
        ],
        out_specs=(
            pl.BlockSpec((1, TH, W, C), lambda n, hb: (n, hb, 0, 0)),
            pl.BlockSpec((1, 1, 2, C), lambda n, hb: (n, hb, 0, 0)),
        ),
        out_shape=(
            jax.ShapeDtypeStruct((N, H, W, C), jnp.float32),       # pre-BN activation
            jax.ShapeDtypeStruct((N, HB, 2, C), jnp.float32),      # per-tile sum/sumsq
        ),
        compiler_params=pltpu.CompilerParams(
            dimension_semantics=("parallel", "parallel")),
        cost_estimate=pl.CostEstimate(flops=flops, transcendentals=0,
                                      bytes_accessed=bytes_accessed),
    )(xp_bf, w_bf)

    # Finalize batch statistics (tiny (2, C) reduction) and fold BN into scale/shift.
    M = N * H * W
    tot = jnp.sum(stats, axis=(0, 1))                 # (2, C)
    mean = tot[0] / M
    var = tot[1] / M - mean * mean                    # biased batch variance
    scale = gamma.astype(jnp.float32) * jax.lax.rsqrt(var + BN_EPS)
    shift = beta.astype(jnp.float32) - mean * scale
    # TODO(synk): PyTorch BatchNorm2d (training mode) also updates running_mean /
    # running_var buffers as a side effect; only the forward output is produced here.

    out_nhwc = pl.pallas_call(
        _bn_apply_kernel,
        grid=(N, HB),
        in_specs=[
            pl.BlockSpec((1, TH, W, C), lambda n, hb: (n, hb, 0, 0)),
            pl.BlockSpec((1, 1, 1, C), lambda n, hb: (0, 0, 0, 0)),
            pl.BlockSpec((1, 1, 1, C), lambda n, hb: (0, 0, 0, 0)),
        ],
        out_specs=pl.BlockSpec((1, TH, W, C), lambda n, hb: (n, hb, 0, 0)),
        out_shape=jax.ShapeDtypeStruct((N, H, W, C), jnp.float32),
        compiler_params=pltpu.CompilerParams(
            dimension_semantics=("parallel", "parallel")),
    )(y_pre, scale.reshape(1, 1, 1, C), shift.reshape(1, 1, 1, C))

    return jnp.transpose(out_nhwc, (0, 3, 1, 2))      # back to NCHW


# ---------------------------------------------------------------------------
# Pure-JAX f32 reference (faithful to the PyTorch module, incl. conv bias)
# ---------------------------------------------------------------------------
def resblock_ref(x_nchw, w_hwio, b, gamma, beta):
    N, C, H, W = x_nchw.shape
    x = jnp.transpose(x_nchw, (0, 2, 3, 1)).astype(jnp.float32)
    xp = jnp.pad(x, ((0, 0), (1, 1), (1, 1), (0, 0)), mode="edge")
    conv = jax.lax.conv_general_dilated(
        xp, w_hwio.astype(jnp.float32), window_strides=(1, 1), padding="VALID",
        dimension_numbers=("NHWC", "HWIO", "NHWC")) + b.reshape(1, 1, 1, C)
    y = x + conv
    mean = jnp.mean(y, axis=(0, 1, 2), keepdims=True)
    var = jnp.mean((y - mean) ** 2, axis=(0, 1, 2), keepdims=True)
    yn = (y - mean) * jax.lax.rsqrt(var + BN_EPS)
    yn = yn * gamma.reshape(1, 1, 1, C) + beta.reshape(1, 1, 1, C)
    return jnp.transpose(yn, (0, 3, 1, 2))


if __name__ == "__main__":
    key = jax.random.PRNGKey(0)
    k_x, k_w, k_b, k_g, k_beta = jax.random.split(key, 5)

    N, C, H, W = 2, 4, 16, 16          # ResBlock requires in_ch == out_ch
    x = jax.random.normal(k_x, (N, C, H, W), dtype=jnp.float32)

    # Deterministic synthetic parameters (Conv2d kaiming-uniform-like; BN affine).
    fan_in = 9 * C
    bound = 1.0 / (fan_in ** 0.5)
    w = jax.random.uniform(k_w, (3, 3, C, C), jnp.float32, -bound, bound)   # HWIO
    b = jax.random.uniform(k_b, (C,), jnp.float32, -bound, bound)
    gamma = 1.0 + 0.1 * jax.random.normal(k_g, (C,), jnp.float32)
    beta = 0.1 * jax.random.normal(k_beta, (C,), jnp.float32)

    out = jax.block_until_ready(jax.jit(resblock_forward)(x, w, b, gamma, beta))
    ref = resblock_ref(x, w, b, gamma, beta)

    assert out.shape == (N, C, H, W), out.shape
    err = float(jnp.max(jnp.abs(out - ref)))
    # Tolerance accounts for bf16 MXU operands (f32 accumulation); reference is f32.
    assert jnp.allclose(out, ref, atol=5e-2, rtol=5e-2), f"max abs err = {err}"
    print("KERNEL_OK")
</pallas_src>

<mosaic_0001>
module attributes {stable_mosaic.version = 11 : i64} {
  func.func @_bn_apply_kernel(%arg0: i32, %arg1: i32, %arg2: memref<1x8x16x4xf32, #tpu.memory_space<vmem>>, %arg3: memref<1x1x1x4xf32, #tpu.memory_space<vmem>>, %arg4: memref<1x1x1x4xf32, #tpu.memory_space<vmem>>, %arg5: memref<1x8x16x4xf32, #tpu.memory_space<vmem>>) attributes {dimension_semantics = [#tpu.dimension_semantics<parallel>, #tpu.dimension_semantics<parallel>], iteration_bounds = array<i64: 2, 2>, scalar_prefetch = 0 : i64, scratch_operands = 0 : i64, tpu.core_type = #tpu.core_type<tc>, window_params = [{transform_indices = @transform_0, window_bounds = array<i64: 1, 8, 16, 4>}, {pipeline_mode = #tpu.pipeline_mode<synchronous>, transform_indices = @transform_1, window_bounds = array<i64: 1, 1, 1, 4>}, {pipeline_mode = #tpu.pipeline_mode<synchronous>, transform_indices = @transform_2, window_bounds = array<i64: 1, 1, 1, 4>}, {transform_indices = @transform_3, window_bounds = array<i64: 1, 8, 16, 4>}]} {
    %c0 = arith.constant 0 : index
    %c0_0 = arith.constant 0 : index
    %c0_1 = arith.constant 0 : index
    %c0_2 = arith.constant 0 : index
    %0 = vector.load %arg2[%c0, %c0_0, %c0_1, %c0_2] : memref<1x8x16x4xf32, #tpu.memory_space<vmem>>, vector<1x8x16x4xf32>
    %c0_3 = arith.constant 0 : index
    %c0_4 = arith.constant 0 : index
    %c0_5 = arith.constant 0 : index
    %c0_6 = arith.constant 0 : index
    %1 = vector.load %arg3[%c0_3, %c0_4, %c0_5, %c0_6] : memref<1x1x1x4xf32, #tpu.memory_space<vmem>>, vector<1x1x1x4xf32>
    %2 = vector.broadcast %1 : vector<1x1x1x4xf32> to vector<1x8x16x4xf32>
    %3 = arith.mulf %0, %2 : vector<1x8x16x4xf32>
    %c0_7 = arith.constant 0 : index
    %c0_8 = arith.constant 0 : index
    %c0_9 = arith.constant 0 : index
    %c0_10 = arith.constant 0 : index
    %4 = vector.load %arg4[%c0_7, %c0_8, %c0_9, %c0_10] : memref<1x1x1x4xf32, #tpu.memory_space<vmem>>, vector<1x1x1x4xf32>
    %5 = vector.broadcast %4 : vector<1x1x1x4xf32> to vector<1x8x16x4xf32>
    %6 = arith.addf %3, %5 : vector<1x8x16x4xf32>
    %c0_11 = arith.constant 0 : index
    %c0_12 = arith.constant 0 : index
    %c0_13 = arith.constant 0 : index
    %c0_14 = arith.constant 0 : index
    %7 = vector.load %arg5[%c0_11, %c0_12, %c0_13, %c0_14] : memref<1x8x16x4xf32, #tpu.memory_space<vmem>>, vector<1x8x16x4xf32>
    tpu.vector_store %arg5[%c0_11, %c0_12, %c0_13, %c0_14], %6 {strides = array<i32>} : memref<1x8x16x4xf32, #tpu.memory_space<vmem>>, vector<1x8x16x4xf32>,
    return
  }
  func.func @transform_0(%arg0: i32, %arg1: i32) -> (i32, i32, i32, i32) {
    %c0_i32 = arith.constant 0 : i32
    %c0_i32_0 = arith.constant 0 : i32
    %c0_i32_1 = arith.constant 0 : i32
    return %arg0, %arg1, %c0_i32, %c0_i32_0 : i32, i32, i32, i32
  }
  func.func @transform_1(%arg0: i32, %arg1: i32) -> (i32, i32, i32, i32) {
    %c0_i32 = arith.constant 0 : i32
    %c0_i32_0 = arith.constant 0 : i32
    %c0_i32_1 = arith.constant 0 : i32
    %c0_i32_2 = arith.constant 0 : i32
    %c0_i32_3 = arith.constant 0 : i32
    return %c0_i32, %c0_i32_0, %c0_i32_1, %c0_i32_2 : i32, i32, i32, i32
  }
  func.func @transform_2(%arg0: i32, %arg1: i32) -> (i32, i32, i32, i32) {
    %c0_i32 = arith.constant 0 : i32
    %c0_i32_0 = arith.constant 0 : i32
    %c0_i32_1 = arith.constant 0 : i32
    %c0_i32_2 = arith.constant 0 : i32
    %c0_i32_3 = arith.constant 0 : i32
    return %c0_i32, %c0_i32_0, %c0_i32_1, %c0_i32_2 : i32, i32, i32, i32
  }
  func.func @transform_3(%arg0: i32, %arg1: i32) -> (i32, i32, i32, i32) {
    %c0_i32 = arith.constant 0 : i32
    %c0_i32_0 = arith.constant 0 : i32
    %c0_i32_1 = arith.constant 0 : i32
    return %arg0, %arg1, %c0_i32, %c0_i32_0 : i32, i32, i32, i32
  }
}

module attributes {stable_mosaic.version = 11 : i64} {
  func.func @_res_conv_stats_kernel(%arg0: i32, %arg1: i32, %arg2: memref<1x18x18x4xbf16, #tpu.memory_space<vmem>>, %arg3: memref<9x4x4xbf16, #tpu.memory_space<vmem>>, %arg4: memref<1x8x16x4xf32, #tpu.memory_space<vmem>>, %arg5: memref<1x1x2x4xf32, #tpu.memory_space<vmem>>) attributes {dimension_semantics = [#tpu.dimension_semantics<parallel>, #tpu.dimension_semantics<parallel>], iteration_bounds = array<i64: 2, 2>, scalar_prefetch = 0 : i64, scratch_operands = 0 : i64, tpu.core_type = #tpu.core_type<tc>, window_params = [{transform_indices = @transform_0, window_bounds = array<i64: 1, 18, 18, 4>}, {pipeline_mode = #tpu.pipeline_mode<synchronous>, transform_indices = @transform_1, window_bounds = array<i64: 9, 4, 4>}, {transform_indices = @transform_2, window_bounds = array<i64: 1, 8, 16, 4>}, {transform_indices = @transform_3, window_bounds = array<i64: 1, 1, 2, 4>}]} {
    %c8_i32 = arith.constant 8 : i32
    %0 = arith.muli %arg1, %c8_i32 : i32
    %1 = tpu.assume_multiple %0, 8 : i32
    %c0 = arith.constant 0 : index
    %2 = arith.index_cast %1 : i32 to index
    %c0_0 = arith.constant 0 : index
    %c0_1 = arith.constant 0 : index
    %3 = vector.load %arg2[%c0, %2, %c0_0, %c0_1] : memref<1x18x18x4xbf16, #tpu.memory_space<vmem>>, vector<1x10x18x4xbf16>
    %4 = vector.shape_cast %3 : vector<1x10x18x4xbf16> to vector<10x18x4xbf16>
    %5 = vector.extract_strided_slice %4 {offsets = [1, 1, 0], sizes = [8, 16, 4], strides = [1, 1, 1]} : vector<10x18x4xbf16> to vector<8x16x4xbf16>
    %6 = vector.shape_cast %5 : vector<8x16x4xbf16> to vector<128x4xbf16>
    %7 = arith.extf %6 : vector<128x4xbf16> to vector<128x4xf32>
    %8 = vector.extract_strided_slice %4 {offsets = [0, 0, 0], sizes = [8, 16, 4], strides = [1, 1, 1]} : vector<10x18x4xbf16> to vector<8x16x4xbf16>
    %9 = vector.shape_cast %8 : vector<8x16x4xbf16> to vector<128x4xbf16>
    %c0_2 = arith.constant 0 : index
    %c0_3 = arith.constant 0 : index
    %c0_4 = arith.constant 0 : index
    %10 = vector.load %arg3[%c0_2, %c0_3, %c0_4] : memref<9x4x4xbf16, #tpu.memory_space<vmem>>, vector<1x4x4xbf16>
    %11 = vector.shape_cast %10 : vector<1x4x4xbf16> to vector<4x4xbf16>
    %cst = arith.constant dense<0.000000e+00> : vector<128x4xf32>
    %12 = tpu.matmul %9, %11, %cst {dimension_numbers = #tpu.dot_dimension_numbers<[1], [0], [0], [1], [0, 0, 1, 1], [], []>} : vector<128x4xbf16>, vector<4x4xbf16>, vector<128x4xf32> -> vector<128x4xf32>
    %13 = arith.addf %7, %12 : vector<128x4xf32>
    %14 = vector.extract_strided_slice %4 {offsets = [0, 1, 0], sizes = [8, 16, 4], strides = [1, 1, 1]} : vector<10x18x4xbf16> to vector<8x16x4xbf16>
    %15 = vector.shape_cast %14 : vector<8x16x4xbf16> to vector<128x4xbf16>
    %c1 = arith.constant 1 : index
    %c0_5 = arith.constant 0 : index
    %c0_6 = arith.constant 0 : index
    %16 = vector.load %arg3[%c1, %c0_5, %c0_6] : memref<9x4x4xbf16, #tpu.memory_space<vmem>>, vector<1x4x4xbf16>
    %17 = vector.shape_cast %16 : vector<1x4x4xbf16> to vector<4x4xbf16>
    %cst_7 = arith.constant dense<0.000000e+00> : vector<128x4xf32>
    %18 = tpu.matmul %15, %17, %cst_7 {dimension_numbers = #tpu.dot_dimension_numbers<[1], [0], [0], [1], [0, 0, 1, 1], [], []>} : vector<128x4xbf16>, vector<4x4xbf16>, vector<128x4xf32> -> vector<128x4xf32>
    %19 = arith.addf %13, %18 : vector<128x4xf32>
    %20 = vector.extract_strided_slice %4 {offsets = [0, 2, 0], sizes = [8, 16, 4], strides = [1, 1, 1]} : vector<10x18x4xbf16> to vector<8x16x4xbf16>
    %21 = vector.shape_cast %20 : vector<8x16x4xbf16> to vector<128x4xbf16>
    %c2 = arith.constant 2 : index
    %c0_8 = arith.constant 0 : index
    %c0_9 = arith.constant 0 : index
    %22 = vector.load %arg3[%c2, %c0_8, %c0_9] : memref<9x4x4xbf16, #tpu.memory_space<vmem>>, vector<1x4x4xbf16>
    %23 = vector.shape_cast %22 : vector<1x4x4xbf16> to vector<4x4xbf16>
    %cst_10 = arith.constant dense<0.000000e+00> : vector<128x4xf32>
    %24 = tpu.matmul %21, %23, %cst_10 {dimension_numbers = #tpu.dot_dimension_numbers<[1], [0], [0], [1], [0, 0, 1, 1], [], []>} : vector<128x4xbf16>, vector<4x4xbf16>, vector<128x4xf32> -> vector<128x4xf32>
    %25 = arith.addf %19, %24 : vector<128x4xf32>
    %26 = vector.extract_strided_slice %4 {offsets = [1, 0, 0], sizes = [8, 16, 4], strides = [1, 1, 1]} : vector<10x18x4xbf16> to vector<8x16x4xbf16>
    %27 = vector.shape_cast %26 : vector<8x16x4xbf16> to vector<128x4xbf16>
    %c3 = arith.constant 3 : index
    %c0_11 = arith.constant 0 : index
    %c0_12 = arith.constant 0 : index
    %28 = vector.load %arg3[%c3, %c0_11, %c0_12] : memref<9x4x4xbf16, #tpu.memory_space<vmem>>, vector<1x4x4xbf16>
    %29 = vector.shape_cast %28 : vector<1x4x4xbf16> to vector<4x4xbf16>
    %cst_13 = arith.constant dense<0.000000e+00> : vector<128x4xf32>
    %30 = tpu.matmul %27, %29, %cst_13 {dimension_numbers = #tpu.dot_dimension_numbers<[1], [0], [0], [1], [0, 0, 1, 1], [], []>} : vector<128x4xbf16>, vector<4x4xbf16>, vector<128x4xf32> -> vector<128x4xf32>
    %31 = arith.addf %25, %30 : vector<128x4xf32>
    %32 = vector.extract_strided_slice %4 {offsets = [1, 1, 0], sizes = [8, 16, 4], strides = [1, 1, 1]} : vector<10x18x4xbf16> to vector<8x16x4xbf16>
    %33 = vector.shape_cast %32 : vector<8x16x4xbf16> to vector<128x4xbf16>
    %c4 = arith.constant 4 : index
    %c0_14 = arith.constant 0 : index
    %c0_15 = arith.constant 0 : index
    %34 = vector.load %arg3[%c4, %c0_14, %c0_15] : memref<9x4x4xbf16, #tpu.memory_space<vmem>>, vector<1x4x4xbf16>
    %35 = vector.shape_cast %34 : vector<1x4x4xbf16> to vector<4x4xbf16>
    %cst_16 = arith.constant dense<0.000000e+00> : vector<128x4xf32>
    %36 = tpu.matmul %33, %35, %cst_16 {dimension_numbers = #tpu.dot_dimension_numbers<[1], [0], [0], [1], [0, 0, 1, 1], [], []>} : vector<128x4xbf16>, vector<4x4xbf16>, vector<128x4xf32> -> vector<128x4xf32>
    %37 = arith.addf %31, %36 : vector<128x4xf32>
    %38 = vector.extract_strided_slice %4 {offsets = [1, 2, 0], sizes = [8, 16, 4], strides = [1, 1, 1]} : vector<10x18x4xbf16> to vector<8x16x4xbf16>
    %39 = vector.shape_cast %38 : vector<8x16x4xbf16> to vector<128x4xbf16>
    %c5 = arith.constant 5 : index
    %c0_17 = arith.constant 0 : index
    %c0_18 = arith.constant 0 : index
    %40 = vector.load %arg3[%c5, %c0_17, %c0_18] : memref<9x4x4xbf16, #tpu.memory_space<vmem>>, vector<1x4x4xbf16>
    %41 = vector.shape_cast %40 : vector<1x4x4xbf16> to vector<4x4xbf16>
    %cst_19 = arith.constant dense<0.000000e+00> : vector<128x4xf32>
    %42 = tpu.matmul %39, %41, %cst_19 {dimension_numbers = #tpu.dot_dimension_numbers<[1], [0], [0], [1], [0, 0, 1, 1], [], []>} : vector<128x4xbf16>, vector<4x4xbf16>, vector<128x4xf32> -> vector<128x4xf32>
    %43 = arith.addf %37, %42 : vector<128x4xf32>
    %44 = vector.extract_strided_slice %4 {offsets = [2, 0, 0], sizes = [8, 16, 4], strides = [1, 1, 1]} : vector<10x18x4xbf16> to vector<8x16x4xbf16>
    %45 = vector.shape_cast %44 : vector<8x16x4xbf16> to vector<128x4xbf16>
    %c6 = arith.constant 6 : index
    %c0_20 = arith.constant 0 : index
    %c0_21 = arith.constant 0 : index
    %46 = vector.load %arg3[%c6, %c0_20, %c0_21] : memref<9x4x4xbf16, #tpu.memory_space<vmem>>, vector<1x4x4xbf16>
    %47 = vector.shape_cast %46 : vector<1x4x4xbf16> to vector<4x4xbf16>
    %cst_22 = arith.constant dense<0.000000e+00> : vector<128x4xf32>
    %48 = tpu.matmul %45, %47, %cst_22 {dimension_numbers = #tpu.dot_dimension_numbers<[1], [0], [0], [1], [0, 0, 1, 1], [], []>} : vector<128x4xbf16>, vector<4x4xbf16>, vector<128x4xf32> -> vector<128x4xf32>
    %49 = arith.addf %43, %48 : vector<128x4xf32>
    %50 = vector.extract_strided_slice %4 {offsets = [2, 1, 0], sizes = [8, 16, 4], strides = [1, 1, 1]} : vector<10x18x4xbf16> to vector<8x16x4xbf16>
    %51 = vector.shape_cast %50 : vector<8x16x4xbf16> to vector<128x4xbf16>
    %c7 = arith.constant 7 : index
    %c0_23 = arith.constant 0 : index
    %c0_24 = arith.constant 0 : index
    %52 = vector.load %arg3[%c7, %c0_23, %c0_24] : memref<9x4x4xbf16, #tpu.memory_space<vmem>>, vector<1x4x4xbf16>
    %53 = vector.shape_cast %52 : vector<1x4x4xbf16> to vector<4x4xbf16>
    %cst_25 = arith.constant dense<0.000000e+00> : vector<128x4xf32>
    %54 = tpu.matmul %51, %53, %cst_25 {dimension_numbers = #tpu.dot_dimension_numbers<[1], [0], [0], [1], [0, 0, 1, 1], [], []>} : vector<128x4xbf16>, vector<4x4xbf16>, vector<128x4xf32> -> vector<128x4xf32>
    %55 = arith.addf %49, %54 : vector<128x4xf32>
    %56 = vector.extract_strided_slice %4 {offsets = [2, 2, 0], sizes = [8, 16, 4], strides = [1, 1, 1]} : vector<10x18x4xbf16> to vector<8x16x4xbf16>
    %57 = vector.shape_cast %56 : vector<8x16x4xbf16> to vector<128x4xbf16>
    %c8 = arith.constant 8 : index
    %c0_26 = arith.constant 0 : index
    %c0_27 = arith.constant 0 : index
    %58 = vector.load %arg3[%c8, %c0_26, %c0_27] : memref<9x4x4xbf16, #tpu.memory_space<vmem>>, vector<1x4x4xbf16>
    %59 = vector.shape_cast %58 : vector<1x4x4xbf16> to vector<4x4xbf16>
    %cst_28 = arith.constant dense<0.000000e+00> : vector<128x4xf32>
    %60 = tpu.matmul %57, %59, %cst_28 {dimension_numbers = #tpu.dot_dimension_numbers<[1], [0], [0], [1], [0, 0, 1, 1], [], []>} : vector<128x4xbf16>, vector<4x4xbf16>, vector<128x4xf32> -> vector<128x4xf32>
    %61 = arith.addf %55, %60 : vector<128x4xf32>
    %62 = vector.shape_cast %61 : vector<128x4xf32> to vector<1x8x16x4xf32>
    %c0_29 = arith.constant 0 : index
    %c0_30 = arith.constant 0 : index
    %c0_31 = arith.constant 0 : index
    %c0_32 = arith.constant 0 : index
    %63 = vector.load %arg4[%c0_29, %c0_30, %c0_31, %c0_32] : memref<1x8x16x4xf32, #tpu.memory_space<vmem>>, vector<1x8x16x4xf32>
    tpu.vector_store %arg4[%c0_29, %c0_30, %c0_31, %c0_32], %62 {strides = array<i32>} : memref<1x8x16x4xf32, #tpu.memory_space<vmem>>, vector<1x8x16x4xf32>,
    %cst_33 = arith.constant dense<0.000000e+00> : vector<4xf32>
    %64 = vector.multi_reduction <add>, %61, %cst_33 [0] : vector<128x4xf32> to vector<4xf32>
    %65 = vector.shape_cast %64 : vector<4xf32> to vector<1x4xf32>
    %c0_34 = arith.constant 0 : index
    %c0_35 = arith.constant 0 : index
    %c0_36 = arith.constant 0 : index
    %c0_37 = arith.constant 0 : index
    %66 = vector.load %arg5[%c0_34, %c0_35, %c0_36, %c0_37] : memref<1x1x2x4xf32, #tpu.memory_space<vmem>>, vector<1x1x1x4xf32>
    %67 = vector.shape_cast %66 : vector<1x1x1x4xf32> to vector<1x4xf32>
    %68 = vector.shape_cast %65 : vector<1x4xf32> to vector<1x1x1x4xf32>
    tpu.vector_store %arg5[%c0_34, %c0_35, %c0_36, %c0_37], %68 {strides = array<i32>} : memref<1x1x2x4xf32, #tpu.memory_space<vmem>>, vector<1x1x1x4xf32>,
    %69 = arith.mulf %61, %61 : vector<128x4xf32>
    %cst_38 = arith.constant dense<0.000000e+00> : vector<4xf32>
    %70 = vector.multi_reduction <add>, %69, %cst_38 [0] : vector<128x4xf32> to vector<4xf32>
    %71 = vector.shape_cast %70 : vector<4xf32> to vector<1x4xf32>
    %c0_39 = arith.constant 0 : index
    %c0_40 = arith.constant 0 : index
    %c1_41 = arith.constant 1 : index
    %c0_42 = arith.constant 0 : index
    %72 = vector.load %arg5[%c0_39, %c0_40, %c1_41, %c0_42] : memref<1x1x2x4xf32, #tpu.memory_space<vmem>>, vector<1x1x1x4xf32>
    %73 = vector.shape_cast %72 : vector<1x1x1x4xf32> to vector<1x4xf32>
    %74 = vector.shape_cast %71 : vector<1x4xf32> to vector<1x1x1x4xf32>
    tpu.vector_store %arg5[%c0_39, %c0_40, %c1_41, %c0_42], %74 {strides = array<i32>} : memref<1x1x2x4xf32, #tpu.memory_space<vmem>>, vector<1x1x1x4xf32>,
    return
  }
  func.func @transform_0(%arg0: i32, %arg1: i32) -> (i32, i32, i32, i32) {
    %c0_i32 = arith.constant 0 : i32
    %c0_i32_0 = arith.constant 0 : i32
    %c0_i32_1 = arith.constant 0 : i32
    %c0_i32_2 = arith.constant 0 : i32
    return %arg0, %c0_i32, %c0_i32_0, %c0_i32_1 : i32, i32, i32, i32
  }
  func.func @transform_1(%arg0: i32, %arg1: i32) -> (i32, i32, i32) {
    %c0_i32 = arith.constant 0 : i32
    %c0_i32_0 = arith.constant 0 : i32
    %c0_i32_1 = arith.constant 0 : i32
    %c0_i32_2 = arith.constant 0 : i32
    return %c0_i32, %c0_i32_0, %c0_i32_1 : i32, i32, i32
  }
  func.func @transform_2(%arg0: i32, %arg1: i32) -> (i32, i32, i32, i32) {
    %c0_i32 = arith.constant 0 : i32
    %c0_i32_0 = arith.constant 0 : i32
    %c0_i32_1 = arith.constant 0 : i32
    return %arg0, %arg1, %c0_i32, %c0_i32_0 : i32, i32, i32, i32
  }
  func.func @transform_3(%arg0: i32, %arg1: i32) -> (i32, i32, i32, i32) {
    %c0_i32 = arith.constant 0 : i32
    %c0_i32_0 = arith.constant 0 : i32
    %c0_i32_1 = arith.constant 0 : i32
    return %arg0, %arg1, %c0_i32, %c0_i32_0 : i32, i32, i32, i32
  }
}

</mosaic_0001>

<bundles_post_ra>
// kernel: resblock_forward.3
= control target key start
LH: loop header
LB: loop body
LE: loop exit
PB: predicated region body
PF: predicated region fallthrough
CT: control target
= control target key end

     0   :  { %s510_s12 = smov 0   ;;  %s512_s13 = smov 0   ;;  %s637_s0 = inlined_call_operand.vmem [shape: f32[2,16,16,4], index: 0, kind: input, shape index: {}]   ;;  %s638_s1 = inlined_call_operand.vmem [shape: f32[1,1,1,4], index: 1, kind: input, shape index: {}]   ;;  %s639_s2 = inlined_call_operand.vmem [shape: f32[1,1,1,4], index: 2, kind: input, shape index: {}]   ;;  %s640_s3 = inlined_call_operand.vmem [shape: f32[2,16,16,4], index: 3, kind: output, shape index: {}]  }
   0x1   :  { %s514_s14 = smov 0   ;;  %s516_s15 = smov 0  }
   0x2   :  { %s518_s16 = smov 0  }
   0x3 LB: > { %s22_s17 = sadd.s32 1, %s480_s14  ;;  %s25_s18 = sadd.s32 1, %s484_s15  ;;  %s488_s16 = sphi %s518_s16, %s13_s16   ;;  %s484_s15 = sphi %s516_s15, %s644_s15   ;;  %s480_s14 = sphi %s514_s14, %s643_s14   ;;  %s476_s13 = sphi %s512_s13, %s642_s13   ;;  %s472_s12 = sphi %s510_s12, %s641_s12  }
   0x4   : > { %p23_p0 = scmp.ge.s32.totalorder %s22_s17, 2  ;;  %p397_p1 = scmp.ge.s32.totalorder %s488_s16, 1 }
   0x5   : > { %p159_p2 = scmp.lt.s32.totalorder %s488_s16, 5 }
   0x6   : > { %s646_s17 = smov (%p23_p0, %s22_s17), 0  ;;  %s648_s18 = smov (!%p23_p0, %s25_s18), %s484_s15 }
   0x7   : > { %p160_p3 = pnand %p397_p1, %p159_p2  ;;  %p27_p4 = scmp.ge.s32.totalorder %s648_s18, 2 }
   0x8   : > { %s398_s19 = sshll.u32 (!%p160_p3), %s472_s12, 3  ;;  %p194_p5 = scmp.lt.s32.totalorder (!%p160_p3), %s476_s13, 1  ;;  %v406_v0 = vld [vmem:[%s638_s1] ss:$0 sm:$0xff] (!%p160_p3)  ;;  %vm277_vm0 = vcmask (!%p160_p3), 31744  }
   0x9   : > { %s650_s18 = smov (%p27_p4, %s648_s18), 0  ;;  %163 = sbr.rel (%p160_p3) target bundleno = 35 (0x23), region = 32 }
   0xa   : > { %p196_p6 = scmp.lt.s32.totalorder (!%p160_p3), %s398_s19, 15  ;;  %v551_v1 = vld [vmem:[%s639_s2] ss:$0 sm:$0xff] (!%p160_p3) }
  0x10   : > { %s652_s13 = smov (!%p194_p5, %s476_s13), 1  ;;  %s654_s19 = smov (!%p196_p6, %s398_s19), 15 }
  0x11   : > { %s400_s20 = sshll.u32 %s652_s13, 5  ;;  %s399_s21 = sshll.u32 %s654_s19, 1 }
  0x12   : > { %s200_s22 = sadd.s32 %s400_s20, %s399_s21 }
  0x13   : > { %s401_s23 = sshll.u32 %s200_s22, 3 }
  0x14   : > { %s546_s28 = scalar_lea.vmem %s637_s0, %s401_s23  ;;  %s562_s6 = scalar_lea.vmem %s640_s3, %s401_s23 }
  0x15   : > { %v215_v2 = vld [vmem:[%s546_s28] sm:$0xff]  ;;  %v216_v3 = vld [vmem:[%s546_s28 + $0x8] sm:$0xff]  ;;  %v217_v4 = vld [vmem:[%s546_s28 + $0x10] sm:$0xff] }
  0x16   : > { %v238_v5 = vmul.f32 %v406_v0, %v215_v2  ;;  %v239_v6 = vmul.f32 %v406_v0, %v216_v3  ;;  %v240_v7 = vmul.f32 %v406_v0, %v217_v4  ;;  %v218_v8 = vld [vmem:[%s546_s28 + $0x18] sm:$0xff]  ;;  %v219_v9 = vld [vmem:[%s546_s28 + $0x20] sm:$0xff]  ;;  %v220_v10 = vld [vmem:[%s546_s28 + $0x28] sm:$0xff] }
  0x17   : > { %v241_v11 = vmul.f32 %v406_v0, %v218_v8  ;;  %v242_v12 = vmul.f32 %v406_v0, %v219_v9  ;;  %v243_v13 = vmul.f32 %v406_v0, %v220_v10  ;;  %v221_v14 = vld [vmem:[%s546_s28 + $0x30] sm:$0xff]  ;;  %v222_v15 = vld [vmem:[%s546_s28 + $0x38] sm:$0xff]  ;;  %v223_v16 = vld [vmem:[%s546_s28 + $0x40] sm:$0xff] }
  0x18   : > { %v261_v17 = vadd.f32 %v551_v1, %v238_v5  ;;  %v262_v18 = vadd.f32 %v551_v1, %v239_v6  ;;  %v263_v19 = vadd.f32 %v551_v1, %v240_v7  ;;  %v244_v20 = vmul.f32 %v406_v0, %v221_v14  ;;  %v224_v21 = vld [vmem:[%s546_s28 + $0x48] sm:$0xff]  ;;  %v225_v22 = vld [vmem:[%s546_s28 + $0x50] sm:$0xff]  ;;  %v226_v23 = vld [vmem:[%s546_s28 + $0x58] sm:$0xff] }
  0x19   : > { %v264_v24 = vadd.f32 %v551_v1, %v241_v11  ;;  %v265_v25 = vadd.f32 %v551_v1, %v242_v12  ;;  %v266_v26 = vadd.f32 %v551_v1, %v243_v13  ;;  %v245_v27 = vmul.f32 %v406_v0, %v222_v15  ;;  %v227_v28 = vld [vmem:[%s546_s28 + $0x60] sm:$0xff]  ;;  %v228_v29 = vld [vmem:[%s546_s28 + $0x68] sm:$0xff]  ;;  %v229_v30 = vld [vmem:[%s546_s28 + $0x70] sm:$0xff] }
  0x1a   : > { %278 = vst.msk [vmem:[%s562_s6] sm:$0xff] %vm277_vm0, %v261_v17  ;;  %279 = vst.msk [vmem:[%s562_s6 + $0x8] sm:$0xff] %vm277_vm0, %v262_v18  ;;  %v267_v31 = vadd.f32 %v551_v1, %v244_v20  ;;  %v246_v32 = vmul.f32 %v406_v0, %v223_v16  ;;  %v247_v33 = vmul.f32 %v406_v0, %v224_v21  ;;  %v230_v35 = vld [vmem:[%s546_s28 + $0x78] sm:$0xff] }
  0x1b   : > { %280 = vst.msk [vmem:[%s562_s6 + $0x10] sm:$0xff] %vm277_vm0, %v263_v19  ;;  %v248_v34 = vmul.f32 %v406_v0, %v225_v22  ;;  %281 = vst.msk [vmem:[%s562_s6 + $0x18] sm:$0xff] %vm277_vm0, %v264_v24  ;;  %v268_v36 = vadd.f32 %v551_v1, %v245_v27  ;;  %v249_v37 = vmul.f32 %v406_v0, %v226_v23 }
  0x1c   : > { %282 = vst.msk [vmem:[%s562_s6 + $0x20] sm:$0xff] %vm277_vm0, %v265_v25  ;;  %283 = vst.msk [vmem:[%s562_s6 + $0x28] sm:$0xff] %vm277_vm0, %v266_v26  ;;  %v250_v38 = vmul.f32 %v406_v0, %v227_v28  ;;  %v251_v39 = vmul.f32 %v406_v0, %v228_v29  ;;  %v269_v40 = vadd.f32 %v551_v1, %v246_v32 }
  0x1d   : > { %284 = vst.msk [vmem:[%s562_s6 + $0x30] sm:$0xff] %vm277_vm0, %v267_v31  ;;  %v270_v41 = vadd.f32 %v551_v1, %v247_v33  ;;  %v271_v42 = vadd.f32 %v551_v1, %v248_v34  ;;  %v252_v43 = vmul.f32 %v406_v0, %v229_v30  ;;  %285 = vst.msk [vmem:[%s562_s6 + $0x38] sm:$0xff] %vm277_vm0, %v268_v36 }
  0x1e   : > { %v272_v44 = vadd.f32 %v551_v1, %v249_v37  ;;  %v273_v45 = vadd.f32 %v551_v1, %v250_v38  ;;  %v274_v46 = vadd.f32 %v551_v1, %v251_v39  ;;  %v253_v47 = vmul.f32 %v406_v0, %v230_v35  ;;  %286 = vst.msk [vmem:[%s562_s6 + $0x40] sm:$0xff] %vm277_vm0, %v269_v40 }
  0x1f   : > { %287 = vst.msk [vmem:[%s562_s6 + $0x48] sm:$0xff] %vm277_vm0, %v270_v41  ;;  %288 = vst.msk [vmem:[%s562_s6 + $0x50] sm:$0xff] %vm277_vm0, %v271_v42  ;;  %v275_v48 = vadd.f32 %v551_v1, %v252_v43 }
  0x20   : > { %289 = vst.msk [vmem:[%s562_s6 + $0x58] sm:$0xff] %vm277_vm0, %v272_v44  ;;  %290 = vst.msk [vmem:[%s562_s6 + $0x60] sm:$0xff] %vm277_vm0, %v273_v45  ;;  %v276_v49 = vadd.f32 %v551_v1, %v253_v47 }
  0x21   : > { %291 = vst.msk [vmem:[%s562_s6 + $0x68] sm:$0xff] %vm277_vm0, %v274_v46  ;;  %292 = vst.msk [vmem:[%s562_s6 + $0x70] sm:$0xff] %vm277_vm0, %v275_v48 }
  0x22   : > { %293 = vst.msk [vmem:[%s562_s6 + $0x78] sm:$0xff] %vm277_vm0, %v276_v49 }
  0x23 PF: > { %s13_s16 = sadd.s32 1, %s488_s16   ;;  %s641_s12 = smov %s480_s14 }
  0x24   : > { %p10_p7 = scmp.ge.s32.totalorder %s13_s16, 6   ;;  %s642_s13 = smov %s484_s15 }
  0x25   : > { %s643_s14 = smov %s646_s17  ;;  %s644_s15 = smov %s650_s18 }
  0x26   :  { %12 = sbr.rel (!%p10_p7) target bundleno = 3 (0x3), region = 62 }

// kernel: resblock_forward.2
= control target key start
LH: loop header
LB: loop body
LE: loop exit
PB: predicated region body
PF: predicated region fallthrough
CT: control target
= control target key end

     0   :  { %s2769_s12 = smov 0   ;;  %s2771_s13 = smov 0   ;;  %s3564_s0 = inlined_call_operand.vmem [shape: bf16[2,18,18,4], index: 0, kind: input, shape index: {}]   ;;  %s3565_s1 = inlined_call_operand.vmem [shape: bf16[9,4,4], index: 1, kind: input, shape index: {}]   ;;  %s3566_s2 = inlined_call_operand.vmem [shape: f32[2,16,16,4], index: 2, kind: output, shape index: {0}]   ;;  %s3567_s3 = inlined_call_operand.vmem [shape: f32[2,2,2,4], index: 3, kind: output, shape index: {1}]  }
   0x1   :  { %s2773_s14 = smov 0   ;;  %s2775_s15 = smov 0  }
   0x2   :  { %s2777_s16 = smov 0  }
   0x3 LB: > { %s23_s17 = sadd.s32 1, %s2739_s14  ;;  %s26_s18 = sadd.s32 1, %s2743_s15  ;;  %s2747_s16 = sphi %s2777_s16, %s14_s16   ;;  %s2743_s15 = sphi %s2775_s15, %s3586_s15   ;;  %s2739_s14 = sphi %s2773_s14, %s3585_s14   ;;  %s2735_s13 = sphi %s2771_s13, %s3584_s13   ;;  %s2731_s12 = sphi %s2769_s12, %s3583_s12  }
   0x4   : > { %p24_p0 = scmp.ge.s32.totalorder %s23_s17, 2  ;;  %p2125_p1 = scmp.ge.s32.totalorder %s2747_s16, 1 }
   0x5   : > { %p156_p2 = scmp.lt.s32.totalorder %s2747_s16, 5 }
   0x6   : > { %s3588_s17 = smov (%p24_p0, %s23_s17), 0  ;;  %s3590_s18 = smov (!%p24_p0, %s26_s18), %s2743_s15 }
   0x7   : > { %p157_p3 = pnand %p2125_p1, %p156_p2  ;;  %p28_p4 = scmp.ge.s32.totalorder %s3590_s18, 2 }
   0x9   : > { %s3592_s18 = smov (%p28_p4, %s3590_s18), 0  ;;  %160 = sbr.rel (%p157_p3) target bundleno = 419 (0x1a3), region = 28 }
  0x10   : > { %v479_v0 = vld [vmem:[%s3565_s1] sm:$0x3]  ;;  %vm545_vm0 = vcmask 1041408   ;;  %p193_p5 = scmp.lt.s32.totalorder %s2735_s13, 1  ;;  %v2809_v2 = vld [vmem:[%s3565_s1 + $0x8] sm:$0x3] }
  0x11   : > { %2648 = vmatprep.subr.msk.bf16.mxu1 %vm545_vm0, %v479_v0  ;;  %v547_v1 = vsel %vm545_vm0, %v479_v0, 0  ;;  %v2152_v3 = vld [vmem:[%s3565_s1 + $0x2] sm:$0x3]  ;;  %2652 = vmatprep.subr.msk.bf16.mxu0 %vm545_vm0, %v2809_v2  ;;  %v2820_v4 = vsel %vm545_vm0, %v2809_v2, 0  ;;  %s2258_s25 = smul.u32 96, %s2731_s12  ;;  %vm520_vm1 = vcmask 31744  }
  0x12   : > { %2341 = vmatpush3.bf16.msra.mxu1 %v547_v1  ;;  %s3594_s13 = smov (!%p193_p5, %s2735_s13), 1  ;;  %2413 = vmatpush3.bf16.msra.mxu0 %v2820_v4  ;;  %v2215_v5 = vld [vmem:[%s3565_s1 + $0xa] sm:$0x3]  ;;  %v737_v6 = vsel %vm545_vm0, %v2152_v3, 0  ;;  %v2839_v7 = vld [vmem:[%s3565_s1 + $0xc] sm:$0x3] }
  0x13   : > { %2649 = vmatprep.subr.msk.bf16.mxu1 %vm545_vm0, %v2152_v3  ;;  %s2658_s28 = smul.u32 216, %s3594_s13  ;;  %2654 = vmatprep.subr.msk.bf16.mxu0 %vm545_vm0, %v2215_v5  ;;  %v2177_v8 = vld [vmem:[%s3565_s1 + $0x4] sm:$0x3]  ;;  %vm252_vm2 = vsmask.f32 3328  ;;  %v2875_v24 = vsel %vm545_vm0, %v2215_v5, 0 }
  0x14   : > { %vm253_vm3 = vsmask.f32 7440  ;;  %v2887_v28 = vsel %vm545_vm0, %v2839_v7, 0  ;;  %v2890_v29 = vsel %vm545_vm0, %v2177_v8, 0  ;;  %vm860_vm5 = vcmask 1042432   ;;  %s2127_s23 = sshll.u32 %s2731_s12, 3 }
  0x15   : > { %s197_s4 = scalar_lea.vmem %s3564_s0, %s2658_s28  ;;  %vm2948_vm4 = vmor %vm252_vm2, %vm253_vm3  ;;  %vm861_vm6 = vcmask 1046532   ;;  %p201_p6 = scmp.lt.s32.totalorder %s2127_s23, 15  ;;  %vm1926_vm8 = vcmask 24576  }
  0x16   : > { %s2833_s5 = scalar_lea.vmem %s197_s4, %s2258_s25  ;;  %vm3049_vm7 = vmor %vm860_vm5, %vm861_vm6  ;;  %s2129_s25 = sshll.u32 %s3594_s13, 5 }
  0x17   : > { %v2845_v9 = vld [vmem:[%s2833_s5] sm:$0xf]  ;;  %v2848_v10 = vld [vmem:[%s2833_s5 + $0x4] sm:$0xf]  ;;  %v2851_v11 = vld [vmem:[%s2833_s5 + $0xc] sm:$0xf] }
  0x18   : > { %v2136_v12 = vcombine.low %v2845_v9, %v2848_v10  ;;  %v663_v13 = vshrl.u32 %v2845_v9, 16  ;;  %v666_v14 = vshll.u32 %v2845_v9, 16  ;;  %v672_v15 = vshll.u32 %v2848_v10, 16  ;;  %v2859_v16 = vld [vmem:[%s2833_s5 + $0x10] sm:$0xf]  ;;  %s3596_s23 = smov (!%p201_p6, %s2127_s23), 15 }
  0x19   : > { %v676_v17 = vshrl.u32 %v2848_v10, 16  ;;  %v3568_v18 = vrot.slane %v2848_v10, 5  ;;  %v2865_v19 = vcombine.low %v2851_v11, %v2859_v16  ;;  %v2868_v20 = vld [vmem:[%s2833_s5 + $0x18] sm:$0xf]  ;;  %v2872_v23 = vld [vmem:[%s2833_s5 + $0x1c] sm:$0xf] }
  0x1a   : > { %2342 = vmatprep.mubr.msk.bf16.mxu1 %vm520_vm1, %v2136_v12  ;;  %v665_v21 = vrot.slane %v663_v13, 4  ;;  %v668_v22 = vrot.slane %v666_v14, 5  ;;  %v2877_v25 = vrot.slane %v672_v15, 5  ;;  %v2883_v27 = vld [vmem:[%s2833_s5 + $0x24] sm:$0xf]  ;;  %v280_v32 = vshrl.u32 %v2868_v20, 16 }
  0x1b   : > { %2343 = vmatmul.mubr.msk.bf16.vlgmr.msra.gmra.mrb[0].mxu1 %vm520_vm1, %v2865_v19  ;;  %v2892_v30 = vrot.slane %v676_v17, 4  ;;  %v2896_v31 = vrot.slane %v3568_v18, 4  ;;  %v2901_v33 = vcombine.low %v2868_v20, %v2872_v23  ;;  %v2904_v34 = vld [vmem:[%s2833_s5 + $0x28] sm:$0xf]  ;;  %v283_v36 = vshll.u32 %v2868_v20, 16  ;;  %s2128_s24 = sshll.u32 %s3596_s23, 1 }
  0x1c   : > { %2359 = vmatpush3.bf16.msra.mxu1 %v737_v6  ;;  %v669_v35 = vor.u32 %v668_v22, %v665_v21  ;;  %v293_v37 = vshrl.u32 %v2872_v23, 16  ;;  %v2171_v38 = vrot.slane %v2868_v20, 9  ;;  %v2910_v39 = vld [vmem:[%s2833_s5 + $0x14] sm:$0x1]  ;;  %v879_v40 = vrot.slane %v2872_v23, 5  ;;  %s205_s26 = sadd.s32 %s2129_s25, %s2128_s24  ;;  %p211_p7 = scmp.lt.s32.totalorder %s2731_s12, 1 }
  0x1d   : > { %2650 = vmatprep.subr.msk.bf16.mxu1 %vm545_vm0, %v2177_v8  ;;  %2346 = vmatprep.mubr.msk.bf16.mxu1 %vm520_vm1, %v2901_v33  ;;  %v304_v41 = vshrl.u32 %v2883_v27, 16  ;;  %v307_v42 = vshll.u32 %v2883_v27, 16  ;;  %v256_v43 = vshrl.u32 %v2851_v11, 16  ;;  %v2921_v44 = vcombine.low %v2883_v27, %v2904_v34  ;;  %v2927_v48 = vld [vmem:[%s2833_s5 + $0x20] sm:$0x1]  ;;  %s2130_s27 = sshll.u32 %s205_s26, 3 }
  0x1e   : > { %v259_v45 = vshll.u32 %v2851_v11, 16  ;;  %v265_v46 = vshll.u32 %v2859_v16, 16  ;;  %v269_v47 = vshrl.u32 %v2859_v16, 16  ;;  %v317_v49 = vshrl.u32 %v2904_v34, 16  ;;  %v2938_v1 = vld [vmem:[%s2833_s5 + $0x30] sm:$0xf]  ;;  %s3443_s30 = scalar_lea.vmem %s3566_s2, %s2130_s27 }
  0x1f   : > { %v258_v50 = vrot.slane %v256_v43, 4  ;;  %v275_v51 = vshll.u32 %v2910_v39, 16  ;;  %v282_v52 = vrot.slane %v280_v32, 4  ;;  %v285_v56 = vrot.slane %v283_v36, 5  ;;  %v2953_v12 = vld [vmem:[%s2833_s5 + $0x34] sm:$0xf] }
  0x20   : > { %v261_v53 = vrot.slane %v259_v45, 5  ;;  %v267_v54 = vrot.slane %v265_v46, 5  ;;  %v271_v55 = vrot.slane %v269_v47, 4  ;;  %v2931_v57 = vrot.slane %v669_v35, 4  ;;  %v2956_v13 = vld [vmem:[%s2833_s5 + $0x3c] sm:$0xf] }
  0x21   : > { %v289_v58 = vshll.u32 %v2872_v23, 16  ;;  %v295_v59 = vrot.slane %v293_v37, 4  ;;  %v299_v60 = vshll.u32 %v2927_v48, 16  ;;  %v277_v63 = vrot.slane %v275_v51, 5  ;;  %v2959_v22 = vld [vmem:[%s2833_s5 + $0x40] sm:$0xf] }
  0x22   : > { %v262_v61 = vor.u32 %v261_v53, %v258_v50  ;;  %v272_v62 = vor.u32 %v271_v55, %v267_v54  ;;  %v286_v0 = vor.u32 %v285_v56, %v282_v52  ;;  %v679_v3 = vor.u32 %v2892_v30, %v2877_v25  ;;  %v2968_v37 = vld [vmem:[%s2833_s5 + $0x2c] sm:$0x1]  ;;  %v239_v26 = vld [vmem:[%s2833_s5 + $0x44] sm:$0x1]  ;;  %s3598_s12 = smov (!%p211_p7, %s2731_s12), 1  ;;  %s2131_s4 = sshll.u32 %s3594_s13, 1 }
  0x23   : > { %2347 = vmatmul.mubr.msk.bf16.gmra.mrb[4].mxu1 %vm520_vm1, %v2921_v44  ;;  %v2944_v5 = vrot.slane %v879_v40, 4  ;;  %v291_v8 = vrot.slane %v289_v58, 5  ;;  %v301_v21 = vrot.slane %v299_v60, 5  ;;  %v328_v32 = vshrl.u32 %v2938_v1, 16 }
  0x24   : > { %v263_v14 = vrot.slane %v262_v61, 4  ;;  %v273_v15 = vrot.slane %v272_v62, 4  ;;  %v287_v17 = vrot.slane %v286_v0, 4  ;;  %v331_v35 = vshll.u32 %v2938_v1, 16 }
  0x25   : > { %v296_v30 = vor.u32 %v295_v59, %v291_v8  ;;  %v2965_v36 = vcombine.low %v2938_v1, %v2953_v12  ;;  %v341_v47 = vshrl.u32 %v2953_v12, 16  ;;  %v2991_v52 = vcombine.low %v2956_v13, %v2959_v22  ;;  %v2996_v59 = vld [vmem:[%s2833_s5 + $0x38] sm:$0x1] }
  0x26   : > { %v2972_v43 = vsel %vm2948_vm4, %v263_v14, %v267_v54  ;;  %v2976_v45 = vsel %vm2948_vm4, %v273_v15, %v277_v63  ;;  %v2980_v46 = vsel %vm2948_vm4, %v287_v17, %v291_v8  ;;  %v306_v53 = vrot.slane %v304_v41, 4  ;;  %v3014_v8 = vld [vmem:[%s2833_s5 + $0x48] sm:$0xf] }
  0x27   : > { %v2985_v50 = vcombine.low %v2972_v43, %v2976_v45  ;;  %v297_v51 = vrot.slane %v296_v30, 4  ;;  %2350 = vmatprep.mubr.msk.bf16.mxu1 %vm520_vm1, %v2965_v36  ;;  %v309_v54 = vrot.slane %v307_v42, 5  ;;  %v313_v55 = vshll.u32 %v2904_v34, 16 }
  0x28   : > { %v319_v56 = vrot.slane %v317_v49, 4  ;;  %v323_v58 = vshll.u32 %v2968_v37, 16  ;;  %v330_v61 = vrot.slane %v328_v32, 4  ;;  %v333_v62 = vrot.slane %v331_v35, 5 }
  0x29   : > { %2414 = vmatprep.mubr.msk.bf16.mxu0 %vm520_vm1, %v2985_v50  ;;  %v3002_v60 = vsel %vm2948_vm4, %v297_v51, %v301_v21  ;;  %v337_v41 = vshll.u32 %v2953_v12, 16  ;;  %v3005_v42 = vrot.slane %v679_v3, 4  ;;  %v310_v63 = vor.u32 %v309_v54, %v306_v53  ;;  %v3018_v3 = vld [vmem:[%s2833_s5 + $0x4c] sm:$0xf] }
  0x2a   : > { %v3009_v49 = vcombine.low %v2980_v46, %v3002_v60  ;;  %v315_v0 = vrot.slane %v313_v55, 5  ;;  %v334_v14 = vor.u32 %v333_v62, %v330_v61  ;;  %v343_v17 = vrot.slane %v341_v47, 4  ;;  %v3025_v61 = vld [vmem:[%s2833_s5 + $0x54] sm:$0xf]  ;;  %v3028_v47 = vld [vmem:[%s2833_s5 + $0x58] sm:$0xf] }
  0x2b   : > { %2351 = vmatmul.mubr.msk.bf16.gmra.mrb[8].mxu1 %vm520_vm1, %v2991_v52  ;;  %v339_v15 = vrot.slane %v337_v41, 5  ;;  %v347_v21 = vshll.u32 %v2996_v59, 16  ;;  %v875_v30 = vrot.slane %v2910_v39, 5  ;;  %v311_v32 = vrot.slane %v310_v63, 4 }
  0x2c   : > { %2415 = vmatmul.mubr.msk.bf16.vlgmr.msra.gmra.mrb[0].mxu0 %vm520_vm1, %v3009_v49  ;;  %v320_v35 = vor.u32 %v319_v56, %v315_v0  ;;  %v325_v51 = vrot.slane %v323_v58, 5  ;;  %v335_v53 = vrot.slane %v334_v14, 4  ;;  %v882_v62 = vrot.slane %v2927_v48, 5 }
  0x2d   : > { %2431 = vmatpush3.bf16.msra.mxu0 %v2875_v24  ;;  %v344_v54 = vor.u32 %v343_v17, %v339_v15  ;;  %v349_v55 = vrot.slane %v347_v21, 5  ;;  %v3033_v39 = vsel %vm2948_vm4, %v311_v32, %v315_v0  ;;  %v3037_v56 = vcombine.low %v3014_v8, %v3018_v3  ;;  %v3066_v21 = vld [vmem:[%s2833_s5 + $0x8] sm:$0x1] }
  0x2e   : > { %v321_v41 = vrot.slane %v320_v35, 4  ;;  %2655 = vmatprep.subr.msk.bf16.mxu0 %vm545_vm0, %v2839_v7  ;;  %v352_v24 = vshrl.u32 %v2956_v13, 16  ;;  %v355_v58 = vshll.u32 %v2956_v13, 16  ;;  %v3045_v63 = vsel %vm2948_vm4, %v335_v53, %v339_v15 }
  0x2f   : > { %v345_v48 = vrot.slane %v344_v54, 4  ;;  %2354 = vmatprep.mubr.msk.bf16.mxu1 %vm520_vm1, %v3037_v56  ;;  %v3061_v7 = vcombine.low %v3025_v61, %v3028_v47  ;;  %v2170_v15 = vrot.slane %v2851_v11, 9  ;;  %v872_v17 = vrot.slane %v2859_v16, 5 }
  0x30   : > { %v3055_v14 = vsel %vm2948_vm4, %v321_v41, %v325_v51  ;;  %v365_v32 = vshrl.u32 %v2959_v22, 16  ;;  %v376_v53 = vshrl.u32 %v3014_v8, 16  ;;  %v883_v41 = vsel %vm3049_vm7, %v2944_v5, %v882_v62 }
  0x31   : > { %3575 = vst [vmem:[#allocation2_spill] sm:$0xff] %v3055_v14  ;;  %v3071_v35 = vcombine.low %v3033_v39, %v3055_v14  ;;  %v3075_v51 = vsel %vm2948_vm4, %v345_v48, %v349_v55  ;;  %v873_v11 = vsel %vm3049_vm7, %v2170_v15, %v872_v17  ;;  %v874_v16 = vrot.slane %v872_v17, 4 }
  0x32   : > { %3576 = vst [vmem:[#allocation3_spill] sm:$0xff] %v3075_v51  ;;  %v3080_v54 = vcombine.low %v3045_v63, %v3075_v51  ;;  %v880_v55 = vsel %vm3049_vm7, %v2171_v38, %v879_v40  ;;  %v682_v48 = vshll.u32 %v3066_v21, 16  ;;  %v2172_v15 = vrot.slane %v2883_v27, 9  ;;  %v3204_v51 = vld [vmem:[%s2833_s5 + $0x68] sm:$0x1] }
  0x33   : > { %2355 = vmatmul.mubr.msk.bf16.gmra.mrb[12].mxu1 %vm520_vm1, %v3061_v7  ;;  %2418 = vmatprep.mubr.msk.bf16.mxu0 %vm520_vm1, %v3071_v35  ;;  %v886_v17 = vrot.slane %v2904_v34, 5  ;;  %v876_v23 = vsel %vm3049_vm7, %v874_v16, %v875_v30  ;;  %v889_v38 = vrot.slane %v2968_v37, 5  ;;  %v893_v40 = vrot.slane %v2953_v12, 5  ;;  %v3129_v16 = vld [vmem:[%s2833_s5 + $0x50] sm:$0x1] }
  0x34   : > { %2419 = vmatmul.mubr.msk.bf16.gmra.mrb[4].mxu0 %vm520_vm1, %v3080_v54  ;;  %v3107_v5 = vcombine.low %v873_v11, %v876_v23  ;;  %v675_v27 = vsel %vm2948_vm4, %v2931_v57, %v2877_v25  ;;  %v684_v34 = vrot.slane %v682_v48, 5  ;;  %v3115_v20 = vcombine.low %v880_v55, %v883_v41 }
  0x35   : > { %v888_v62 = vrot.slane %v886_v17, 4  ;;  %v887_v37 = vsel %vm3049_vm7, %v2172_v15, %v886_v17  ;;  %v2173_v30 = vrot.slane %v2938_v1, 9  ;;  %v895_v57 = vrot.slane %v893_v40, 4 }
  0x36   : > { %2432 = vmatprep.mubr.msk.bf16.mxu0 %vm520_vm1, %v3107_v5  ;;  %v685_v12 = vsel %vm2948_vm4, %v3005_v42, %v684_v34  ;;  %v900_v11 = vrot.slane %v2959_v22, 5  ;;  %v896_v41 = vrot.slane %v2996_v59, 5  ;;  %v2174_v1 = vrot.slane %v2956_v13, 9 }
  0x37   : > { %v890_v25 = vsel %vm3049_vm7, %v888_v62, %v889_v38  ;;  %v2153_v55 = vcombine.low %v675_v27, %v685_v12  ;;  %v903_v48 = vrot.slane %v239_v26, 5  ;;  %v2175_v23 = vrot.slane %v3014_v8, 9 }
  0x38   : > { %v3133_v15 = vcombine.low %v887_v37, %v890_v25  ;;  %v902_v17 = vrot.slane %v900_v11, 4  ;;  %v907_v42 = vrot.slane %v3018_v3, 5  ;;  %v910_v38 = vrot.slane %v3129_v16, 5  ;;  %v3148_v25 = vld [vmem:[%s3565_s1 + $0xe] sm:$0x3] }
  0x39   : > { %2360 = vmatprep.mubr.msk.bf16.mxu1 %vm520_vm1, %v2153_v55  ;;  %v354_v34 = vrot.slane %v352_v24, 4  ;;  %v357_v62 = vrot.slane %v355_v58, 5  ;;  %v361_v27 = vshll.u32 %v2959_v22, 16  ;;  %v400_v59 = vshrl.u32 %v3025_v61, 16 }
  0x3a   : > { %v894_v13 = vsel %vm3049_vm7, %v2173_v30, %v893_v40  ;;  %v909_v37 = vrot.slane %v907_v42, 4  ;;  %v367_v12 = vrot.slane %v365_v32, 4  ;;  %v897_v22 = vsel %vm3049_vm7, %v895_v57, %v896_v41  ;;  %v3157_v40 = vld [vmem:[%s2833_s5 + $0x5c] sm:$0x1]  ;;  %v3162_v32 = vld [vmem:[%s3565_s1 + $0x6] sm:$0x3] }
  0x3b   : > { %2361 = vmatmul.mubr.msk.bf16.vlgmr.msra.gmra.mrb[0].mxu1 %vm520_vm1, %v2985_v50  ;;  %v358_v50 = vor.u32 %v357_v62, %v354_v34  ;;  %v363_v24 = vrot.slane %v361_v27, 5  ;;  %v371_v58 = vshll.u32 %v239_v26, 16  ;;  %v901_v30 = vsel %vm3049_vm7, %v2174_v1, %v900_v11  ;;  %v3180_v27 = vld [vmem:[%s2833_s5 + $0x60] sm:$0xf] }
  0x3c   : > { %2433 = vmatmul.mubr.msk.bf16.vlgmr.msra.gmra.mrb[0].mxu0 %vm520_vm1, %v3115_v20  ;;  %2364 = vmatprep.mubr.msk.bf16.mxu1 %vm520_vm1, %v3009_v49  ;;  %v904_v57 = vsel %vm3049_vm7, %v902_v17, %v903_v48  ;;  %v2176_v26 = vrot.slane %v3025_v61, 9  ;;  %v914_v55 = vrot.slane %v3028_v47, 5  ;;  %v403_v41 = vshll.u32 %v3025_v61, 16 }
  0x3d   : > { %2449 = vmatpush3.bf16.msra.mxu0 %v2887_v28  ;;  %2436 = vmatprep.mubr.msk.bf16.mxu0 %vm520_vm1, %v3133_v15  ;;  %v908_v28 = vsel %vm3049_vm7, %v2175_v23, %v907_v42  ;;  %v911_v34 = vsel %vm3049_vm7, %v909_v37, %v910_v38  ;;  %v368_v62 = vor.u32 %v367_v12, %v363_v24  ;;  %v413_v11 = vshrl.u32 %v3028_v47, 16 }
  0x3e   : > { %2377 = vmatpush3.bf16.msra.mxu1 %v2890_v29  ;;  %2656 = vmatprep.subr.msk.bf16.mxu0 %vm545_vm0, %v3148_v25  ;;  %v359_v1 = vrot.slane %v358_v50, 4  ;;  %v916_v48 = vrot.slane %v914_v55, 4  ;;  %v917_v61 = vrot.slane %v3157_v40, 5  ;;  %v3187_v29 = vld [vmem:[%s2833_s5 + $0x64] sm:$0xf]  ;;  %v3191_v17 = vcombine.low %v894_v13, %v897_v22 }
  0x3f   : > { %2651 = vmatprep.subr.msk.bf16.mxu1 %vm545_vm0, %v3162_v32  ;;  %v369_v23 = vrot.slane %v368_v62, 4  ;;  %v373_v42 = vrot.slane %v371_v58, 5  ;;  %v378_v38 = vrot.slane %v376_v53, 4  ;;  %v3195_v37 = vcombine.low %v901_v30, %v904_v57 }
  0x40   : > { %v3197_v12 = vcombine.low %v908_v28, %v911_v34  ;;  %v915_v50 = vsel %vm3049_vm7, %v2176_v26, %v914_v55  ;;  %v3577_v18 = vshll.u32 %v3014_v8, 16  ;;  %v2214_v13 = vrot.slane %v3180_v27, 9 }
  0x41   : > { %v1338_v22 = vrot.slane %v3187_v29, 5  ;;  %v385_v58 = vshll.u32 %v3018_v3, 16  ;;  %v3578_v53 = vshrl.u32 %v3018_v3, 16  ;;  %v3215_v57 = vsel %vm2948_vm4, %v359_v1, %v363_v24 }
  0x42   : > { %v381_v14 = vrot.slane %v3577_v18, 5  ;;  %v918_v18 = vsel %vm3049_vm7, %v916_v48, %v917_v61  ;;  %v395_v26 = vshll.u32 %v3129_v16, 16  ;;  %v3226_v3 = vsel %vm2948_vm4, %v369_v23, %v373_v42 }
  0x43   : > { %v391_v30 = vrot.slane %v3578_v53, 4  ;;  %2365 = vmatmul.mubr.msk.bf16.gmra.mrb[4].mxu1 %vm520_vm1, %v3071_v35  ;;  %v387_v55 = vrot.slane %v385_v58, 5  ;;  %v402_v28 = vrot.slane %v400_v59, 4  ;;  %v405_v24 = vrot.slane %v403_v41, 5 }
  0x44   : > { %v382_v8 = vor.u32 %v381_v14, %v378_v38  ;;  %2437 = vmatmul.mubr.msk.bf16.gmra.mrb[4].mxu0 %vm520_vm1, %v3191_v17  ;;  %2368 = vmatprep.mubr.msk.bf16.mxu1 %vm520_vm1, %v3080_v54  ;;  %v1341_v14 = vrot.slane %v3204_v51, 5  ;;  %v409_v34 = vshll.u32 %v3028_v47, 16  ;;  %v415_v62 = vrot.slane %v413_v11, 4 }
  0x45   : > { %2440 = vmatprep.mubr.msk.bf16.mxu0 %vm520_vm1, %v3195_v37  ;;  %v392_v1 = vor.u32 %v391_v30, %v387_v55  ;;  %v397_v48 = vrot.slane %v395_v26, 5  ;;  %v406_v61 = vor.u32 %v405_v24, %v402_v28  ;;  %v419_v38 = vshll.u32 %v3157_v40, 16  ;;  %v3245_v30 = vld [vmem:[%s2833_s5 + $0x6c] sm:$0xf] }
  0x46   : > { %v383_v16 = vrot.slane %v382_v8, 4  ;;  %v3235_v59 = vcombine.low %v3215_v57, %v3226_v3  ;;  %v3237_v41 = vcombine.low %v915_v50, %v918_v18  ;;  %v1340_v23 = vrot.slane %v1338_v22, 4 }
  0x47   : > { %v411_v42 = vrot.slane %v409_v34, 5  ;;  %v393_v47 = vrot.slane %v392_v1, 4  ;;  %v407_v11 = vrot.slane %v406_v61, 4  ;;  %v868_v53 = vrot.slane %v3066_v21, 5 }
  0x48   : > { %v3241_v58 = vsel %vm2948_vm4, %v383_v16, %v387_v55  ;;  %v421_v8 = vrot.slane %v419_v38, 5  ;;  %v1594_v26 = vshrl.u32 %v3245_v30, 16  ;;  %v1597_v28 = vshll.u32 %v3245_v30, 16  ;;  %v3256_v55 = vld [vmem:[%s2833_s5 + $0x70] sm:$0xf] }
  0x49   : > { %v416_v40 = vor.u32 %v415_v62, %v411_v42  ;;  %v1339_v50 = vsel %vm3049_vm7, %v2214_v13, %v1338_v22  ;;  %v3253_v18 = vsel %vm2948_vm4, %v393_v47, %v397_v48  ;;  %v1342_v21 = vsel %vm3049_vm7, %v1340_v23, %v1341_v14  ;;  %v251_v38 = vld [vmem:[%s2833_s5 + $0x74] sm:$0x1]  ;;  %s214_s5 = sadd.s32 %s2131_s4, %s3598_s12 }
  0x4a   : > { %v3264_v24 = vcombine.low %v3241_v58, %v3253_v18  ;;  %v1607_v13 = vshrl.u32 %v3256_v55, 16  ;;  %v3271_v22 = vsel %vm2948_vm4, %v407_v11, %v411_v42  ;;  %v1596_v34 = vrot.slane %v1594_v26, 4  ;;  %s2132_s6 = sshll.u32 %s214_s5, 1 }
  0x4b   : > { %2369 = vmatmul.mubr.msk.bf16.gmra.mrb[8].mxu1 %vm520_vm1, %v3235_v59  ;;  %v417_v16 = vrot.slane %v416_v40, 4  ;;  %v3579_v62 = vrot.slane %v2848_v10, 5  ;;  %v3580_v1 = vrot.slane %v2845_v9, 9  ;;  %v869_v61 = vsel %vm3049_vm7, %v2896_v31, %v868_v53  ;;  %s216_s9 = scalar_lea.vmem %s3567_s3, %s2132_s6 }
  0x4c   : > { %2441 = vmatmul.mubr.msk.bf16.gmra.mrb[8].mxu0 %vm520_vm1, %v3197_v12  ;;  %2372 = vmatprep.mubr.msk.bf16.mxu1 %vm520_vm1, %v3264_v24  ;;  %v1599_v23 = vrot.slane %v1597_v28, 5  ;;  %v3291_v42 = vcombine.low %v1339_v50, %v1342_v21  ;;  %v1603_v10 = vshll.u32 %v3256_v55, 16  ;;  %v1609_v40 = vrot.slane %v1607_v13, 4 }
  0x4d   : > { %2444 = vmatprep.mubr.msk.bf16.mxu0 %vm520_vm1, %v3237_v41  ;;  %v3279_v14 = vsel %vm2948_vm4, %v417_v16, %v421_v8  ;;  %v866_v48 = vsel %vm3049_vm7, %v3580_v1, %v3579_v62  ;;  %v1613_v8 = vshll.u32 %v251_v38, 16  ;;  %v2245_v26 = vrot.slane %v3245_v30, 9 }
  0x4e   : > { %v3295_v47 = vcombine.low %v3271_v22, %v3279_v14  ;;  %v1600_v11 = vor.u32 %v1599_v23, %v1596_v34  ;;  %v2178_v9 = vcombine.low %v866_v48, %v869_v61  ;;  %v1744_v16 = vrot.slane %v3256_v55, 5 }
  0x4f   : > { %v1605_v31 = vrot.slane %v1603_v10, 5  ;;  %v1747_v53 = vrot.slane %v251_v38, 5  ;;  %v1615_v34 = vrot.slane %v1613_v8, 5  ;;  %v1096_v0 = vsel %vm545_vm0, %v3162_v32, 0  ;;  %v2246_v10 = vld [vmem:[%s3565_s1 + $0x10] sm:$0x3] }
  0x50   : > { %v1601_v62 = vrot.slane %v1600_v11, 4  ;;  %v3302_v28 = vsel %vm3049_vm7, %v2245_v26, %v1744_v16  ;;  %v1746_v50 = vrot.slane %v1744_v16, 4  ;;  %v1626_v11 = vsel %vm545_vm0, %v3148_v25, 0 }
  0x51   : > { %v1610_v13 = vor.u32 %v1609_v40, %v1605_v31  ;;  %v424_v25 = vshrl.u32 %v3180_v27, 16  ;;  %v427_v32 = vshll.u32 %v3180_v27, 16  ;;  %v433_v40 = vshll.u32 %v3187_v29, 16 }
  0x52   : > { %v1606_v21 = vsel %vm2948_vm4, %v1601_v62, %v1605_v31  ;;  %v3313_v1 = vsel %vm3049_vm7, %v1746_v50, %v1747_v53  ;;  %v465_v6 = vunpack.c.l.bf16 %v2980_v46  ;;  %v464_v46 = vunpack.c.l.bf16 %v2976_v45 }
  0x53   : > { %2373 = vmatmul.mubr.msk.bf16.gmra.mrb[12].mxu1 %vm520_vm1, %v3295_v47  ;;  %v1611_v48 = vrot.slane %v1610_v13, 4  ;;  %v2247_v61 = vcombine.low %v3302_v28, %v3313_v1  ;;  %v429_v8 = vrot.slane %v427_v32, 5  ;;  %v435_v26 = vrot.slane %v433_v40, 5 }
  0x54   : > { %2445 = vmatmul.mubr.msk.bf16.gmra.mrb[12].mxu0 %vm520_vm1, %v3291_v42  ;;  %2378 = vmatprep.mubr.msk.bf16.mxu1 %vm520_vm1, %v2178_v9  ;;  %v437_v9 = vshrl.u32 %v3187_v29, 16  ;;  %v467_v1 = vunpack.c.l.bf16 %v3033_v39 }
  0x55   : > { %2450 = vmatprep.mubr.msk.bf16.mxu0 %vm520_vm1, %v2901_v33  ;;  %v1616_v38 = vsel %vm2948_vm4, %v1611_v48, %v1615_v34 }
  0x56   : > { %v2236_v23 = vcombine.low %v1606_v21, %v1616_v38  ;;  %v439_v16 = vrot.slane %v437_v9, 4  ;;  %v469_v21 = vunpack.c.l.bf16 %v3045_v63  ;;  %v3581_v38 = vld [vmem:[#allocation3_spill] sm:$0xff]  ;;  %v471_v9 = vunpack.c.l.bf16 %v3215_v57 }
  0x5b   : > { %2379 = vmatmul.mubr.msk.bf16.vlgmr.msra.gmra.mrb[0].mxu1 %vm520_vm1, %v3107_v5  ;;  %v2195_v5 = vcombine.low %v3180_v27, %v3187_v29  ;;  %v443_v27 = vshll.u32 %v3204_v51, 16 }
  0x5c   : > { %2451 = vmatmul.mubr.msk.bf16.vlgmr.msra.gmra.mrb[0].mxu0 %vm520_vm1, %v2921_v44  ;;  %2382 = vmatprep.mubr.msk.bf16.mxu1 %vm520_vm1, %v3115_v20 }
  0x5d   : > { %2467 = vmatpush3.bf16.msra.mxu0 %v1626_v11  ;;  %2454 = vmatprep.mubr.msk.bf16.mxu0 %vm520_vm1, %v2965_v36  ;;  %v445_v31 = vrot.slane %v443_v27, 5  ;;  %v3582_v11 = vld [vmem:[#allocation2_spill] sm:$0xff] }
  0x5e   : > { %2395 = vmatpush3.bf16.msra.mxu1 %v1096_v0  ;;  %2657 = vmatprep.subr.msk.bf16.mxu0 %vm545_vm0, %v2246_v10  ;;  %v468_v0 = vunpack.c.l.bf16 %v3582_v11 }
  0x5f   : > { %2653 = vmatprep.subr.msk.bf16.mxu1 %vm545_vm0, %v2809_v2  ;;  %v2226_v2 = vcombine.low %v3245_v30, %v3256_v55  ;;  %v1758_v30 = vsel %vm545_vm0, %v2246_v10, 0  ;;  %v426_v55 = vrot.slane %v424_v25, 4  ;;  %v473_v10 = vunpack.c.l.bf16 %v3241_v58 }
  0x63   : > { %2383 = vmatmul.mubr.msk.bf16.gmra.mrb[4].mxu1 %vm520_vm1, %v3133_v15 }
  0x64   : > { %2455 = vmatmul.mubr.msk.bf16.gmra.mrb[4].mxu0 %vm520_vm1, %v2991_v52  ;;  %2386 = vmatprep.mubr.msk.bf16.mxu1 %vm520_vm1, %v3191_v17 }
  0x65   : > { %2458 = vmatprep.mubr.msk.bf16.mxu0 %vm520_vm1, %v3037_v56 }
  0x6b   : > { %2387 = vmatmul.mubr.msk.bf16.gmra.mrb[8].mxu1 %vm520_vm1, %v3195_v37 }
  0x6c   : > { %2459 = vmatmul.mubr.msk.bf16.gmra.mrb[8].mxu0 %vm520_vm1, %v3061_v7  ;;  %2390 = vmatprep.mubr.msk.bf16.mxu1 %vm520_vm1, %v3197_v12 }
  0x6d   : > { %2462 = vmatprep.mubr.msk.bf16.mxu0 %vm520_vm1, %v2195_v5 }
  0x73   : > { %2391 = vmatmul.mubr.msk.bf16.gmra.mrb[12].mxu1 %vm520_vm1, %v3237_v41 }
  0x74   : > { %2463 = vmatmul.mubr.msk.bf16.gmra.mrb[12].mxu0 %vm520_vm1, %v2226_v2  ;;  %2396 = vmatprep.mubr.msk.bf16.mxu1 %vm520_vm1, %v2865_v19  ;;  %v430_v19 = vor.u32 %v429_v8, %v426_v55 }
  0x75   : > { %2468 = vmatprep.mubr.msk.bf16.mxu0 %vm520_vm1, %v3009_v49  ;;  %v440_v49 = vor.u32 %v439_v16, %v435_v26 }
  0x76   : > { %v431_v29 = vrot.slane %v430_v19, 4 }
  0x77   : > { %v441_v62 = vrot.slane %v440_v49, 4 }
  0x7b   : > { %2397 = vmatmul.mubr.msk.bf16.vlgmr.msra.gmra.mrb[0].mxu1 %vm520_vm1, %v2901_v33  ;;  %v3394_v33 = vsel %vm2948_vm4, %v441_v62, %v445_v31 }
  0x7c   : > { %2469 = vmatmul.mubr.msk.bf16.vlgmr.msra.gmra.mrb[0].mxu0 %vm520_vm1, %v3071_v35  ;;  %2400 = vmatprep.mubr.msk.bf16.mxu1 %vm520_vm1, %v2921_v44 }
  0x7d   : > { %2485 = vmatpush3.bf16.msra.mxu0 %v1758_v30  ;;  %2472 = vmatprep.mubr.msk.bf16.mxu0 %vm520_vm1, %v3080_v54 }
  0x7e   : > { %2503 = vmatpush3.bf16.msra.mxu1 %v2820_v4  ;;  %v3390_v4 = vsel %vm2948_vm4, %v431_v29, %v435_v26 }
  0x7f   : > { %v2205_v44 = vcombine.low %v3390_v4, %v3394_v33 }
  0x83   : > { %2401 = vmatmul.mubr.msk.bf16.gmra.mrb[4].mxu1 %vm520_vm1, %v2965_v36 }
  0x84   : > { %2473 = vmatmul.mubr.msk.bf16.gmra.mrb[4].mxu0 %vm520_vm1, %v3235_v59  ;;  %2404 = vmatprep.mubr.msk.bf16.mxu1 %vm520_vm1, %v2991_v52 }
  0x85   : > { %2476 = vmatprep.mubr.msk.bf16.mxu0 %vm520_vm1, %v3264_v24 }
  0x8b   : > { %2405 = vmatmul.mubr.msk.bf16.gmra.mrb[8].mxu1 %vm520_vm1, %v3037_v56 }
  0x8c   : > { %2477 = vmatmul.mubr.msk.bf16.gmra.mrb[8].mxu0 %vm520_vm1, %v3295_v47  ;;  %2408 = vmatprep.mubr.msk.bf16.mxu1 %vm520_vm1, %v3061_v7 }
  0x8d   : > { %2480 = vmatprep.mubr.msk.bf16.mxu0 %vm520_vm1, %v2205_v44 }
  0x93   : > { %2409 = vmatmul.mubr.msk.bf16.gmra.mrb[12].mxu1 %vm520_vm1, %v2195_v5 }
  0x94   : > { %2481 = vmatmul.mubr.msk.bf16.gmra.mrb[12].mxu0 %vm520_vm1, %v2236_v23  ;;  %2422 = vmatprep.mubr.msk.bf16.mxu1 %vm520_vm1, %v3235_v59  ;;  %v470_v23 = vunpack.c.l.bf16 %v3581_v38 }
  0x95   : > { %2486 = vmatprep.mubr.msk.bf16.mxu0 %vm520_vm1, %v3115_v20 }
  0x9b   : > { %2423 = vmatmul.mubr.msk.bf16.vlgmr.msra.gmra.mrb[8].mxu1 %vm520_vm1, %v3264_v24 }
  0x9c   : > { %2487 = vmatmul.mubr.msk.bf16.vlgmr.msra.gmra.mrb[0].mxu0 %vm520_vm1, %v3133_v15  ;;  %2426 = vmatprep.mubr.msk.bf16.mxu1 %vm520_vm1, %v3295_v47 }
  0x9d   : > { %2490 = vmatprep.mubr.msk.bf16.mxu0 %vm520_vm1, %v3191_v17  ;;  %v463_v17 = vunpack.c.l.bf16 %v2972_v43 }
  0xa3   : > { %2427 = vmatmul.mubr.msk.bf16.gmra.mrb[12].mxu1 %vm520_vm1, %v2205_v44 }
  0xa4   : > { %2491 = vmatmul.mubr.msk.bf16.gmra.mrb[4].mxu0 %vm520_vm1, %v3195_v37  ;;  %v466_v37 = vunpack.c.l.bf16 %v3002_v60 }
  0xa5   : > { %2494 = vmatprep.mubr.msk.bf16.mxu0 %vm520_vm1, %v3197_v12 }
  0xac   : > { %2495 = vmatmul.mubr.msk.bf16.gmra.mrb[8].mxu0 %vm520_vm1, %v3237_v41 }
  0xad   : > { %2498 = vmatprep.mubr.msk.bf16.mxu0 %vm520_vm1, %v3291_v42 }
  0xb4   : > { %2499 = vmatmul.mubr.msk.bf16.gmra.mrb[12].mxu0 %vm520_vm1, %v2247_v61 }
 0x14e   : > { %v2398_v36 = vpop.f32.mrb[0].mxu1 }
 0x14f   : > { %v2504_v52 = vadd.f32 %v2398_v36, %v465_v6  ;;  %v1132_v56 = vpop.f32.mrb[1].mxu1 }
 0x150   : > { %v2399_v7 = vpop.f32.mrb[2].mxu1  ;;  %v2506_v59 = vadd.f32 %v1132_v56, %v463_v17 }
 0x151   : > { %v1135_v35 = vpop.f32.mrb[3].mxu1  ;;  %v2508_v42 = vadd.f32 %v2399_v7, %v466_v37 }
 0x152   : > { %v2510_v45 = vadd.f32 %v1135_v35, %v464_v46 }
 0x156   : > { %v2402_v51 = vpop.f32.mrb[4].mxu1 }
 0x157   : > { %v1148_v54 = vpop.f32.mrb[5].mxu1  ;;  %v2512_v25 = vadd.f32 %v2402_v51, %v469_v21 }
 0x158   : > { %v2403_v20 = vpop.f32.mrb[6].mxu1  ;;  %v2514_v55 = vadd.f32 %v1148_v54, %v467_v1  ;;  %v474_v54 = vunpack.c.l.bf16 %v3253_v18 }
 0x159   : > { %v1151_v15 = vpop.f32.mrb[7].mxu1  ;;  %v2516_v49 = vadd.f32 %v2403_v20, %v470_v23 }
 0x15a   : > { %v2518_v44 = vadd.f32 %v1151_v15, %v468_v0 }
 0x16e   : > { %v3438_v12 = vpop.f32.mrb[8].mxu1 }
 0x16f   : > { %v2488_v41 = vpop.f32.mrb[0].mxu0  ;;  %v3445_v24 = vpop.f32.mrb[9].mxu1 }
 0x170   : > { %v2505_v43 = vadd.f32 %v2504_v52, %v2488_v41  ;;  %v1794_v47 = vpop.f32.mrb[1].mxu0  ;;  %v3447_v60 = vpop.f32.mrb[10].mxu1 }
 0x171   : > { %v2507_v53 = vadd.f32 %v2506_v59, %v1794_v47  ;;  %v2489_v28 = vpop.f32.mrb[2].mxu0  ;;  %v3449_v50 = vpop.f32.mrb[11].mxu1 }
 0x172   : > { %1875 = vst.msk [vmem:[%s3443_s30 + $0x10] sm:$0xff] %vm520_vm1, %v2505_v43  ;;  %v2509_v13 = vadd.f32 %v2508_v42, %v2489_v28  ;;  %v1797_v34 = vpop.f32.mrb[3].mxu0  ;;  %v1930_v5 = vmul.f32 %v2505_v43, %v2505_v43  ;;  %v1892_v8 = vsel %vm520_vm1, %v2505_v43, 0.0  ;;  %v2520_v43 = vadd.f32 %v3438_v12, %v473_v10 }
 0x173   : > { %1873 = vst.msk [vmem:[%s3443_s30] sm:$0xff] %vm520_vm1, %v2507_v53  ;;  %v1928_v48 = vmul.f32 %v2507_v53, %v2507_v53  ;;  %v2511_v61 = vadd.f32 %v2510_v45, %v1797_v34  ;;  %v1889_v63 = vsel %vm520_vm1, %v2507_v53, 0.0  ;;  %v472_v45 = vunpack.c.l.bf16 %v3226_v3 }
 0x174   : > { %1876 = vst.msk [vmem:[%s3443_s30 + $0x18] sm:$0xff] %vm520_vm1, %v2509_v13  ;;  %v1931_v32 = vmul.f32 %v2509_v13, %v2509_v13  ;;  %v1947_v6 = vsel %vm520_vm1, %v1930_v5, 0.0  ;;  %v1894_v36 = vsel %vm520_vm1, %v2509_v13, 0.0  ;;  %v2522_v34 = vadd.f32 %v3445_v24, %v471_v9 }
 0x175   : > { %1874 = vst.msk [vmem:[%s3443_s30 + $0x8] sm:$0xff] %vm520_vm1, %v2511_v61  ;;  %v1890_v2 = vsel %vm520_vm1, %v2511_v61, 0.0  ;;  %v1929_v39 = vmul.f32 %v2511_v61, %v2511_v61  ;;  %v1944_v58 = vsel %vm520_vm1, %v1928_v48, 0.0  ;;  %v2524_v12 = vadd.f32 %v3447_v60, %v474_v54 }
 0x176   : > { %v1891_v40 = vadd.f32 %v1890_v2, %v1889_v63  ;;  %v3467_v30 = vpop.f32.mrb[12].mxu1  ;;  %v1949_v35 = vsel %vm520_vm1, %v1931_v32, 0.0  ;;  %v477_v48 = vunpack.c.l.bf16 %v3390_v4  ;;  %v2526_v10 = vadd.f32 %v3449_v50, %v472_v45 }
 0x177   : > { %v1945_v26 = vsel %vm520_vm1, %v1929_v39, 0.0  ;;  %v2492_v16 = vpop.f32.mrb[4].mxu0  ;;  %v3472_v19 = vpop.f32.mrb[13].mxu1  ;;  %v475_v4 = vunpack.c.l.bf16 %v3271_v22  ;;  %v476_v22 = vunpack.c.l.bf16 %v3279_v14 }
 0x178   : > { %v1893_v27 = vadd.f32 %v1892_v8, %v1891_v40  ;;  %v1946_v29 = vadd.f32 %v1945_v26, %v1944_v58  ;;  %v2513_v62 = vadd.f32 %v2512_v25, %v2492_v16  ;;  %v1810_v31 = vpop.f32.mrb[5].mxu0  ;;  %v3474_v57 = vpop.f32.mrb[14].mxu1  ;;  %v478_v58 = vunpack.c.l.bf16 %v3394_v33 }
 0x179   : > { %v2515_v52 = vadd.f32 %v2514_v55, %v1810_v31  ;;  %v2493_v56 = vpop.f32.mrb[6].mxu0  ;;  %v3478_v7 = vpop.f32.mrb[15].mxu1 }
 0x17a   : > { %v1948_v51 = vadd.f32 %v1947_v6, %v1946_v29  ;;  %1879 = vst.msk [vmem:[%s3443_s30 + $0x30] sm:$0xff] %vm520_vm1, %v2513_v62  ;;  %v1895_v20 = vadd.f32 %v1894_v36, %v1893_v27  ;;  %v1813_v17 = vpop.f32.mrb[7].mxu0  ;;  %v2517_v46 = vadd.f32 %v2516_v49, %v2493_v56  ;;  %v1934_v53 = vmul.f32 %v2513_v62, %v2513_v62 }
 0x17b   : > { %1877 = vst.msk [vmem:[%s3443_s30 + $0x20] sm:$0xff] %vm520_vm1, %v2515_v52  ;;  %v1896_v15 = vsel %vm520_vm1, %v2515_v52, 0.0  ;;  %v1932_v37 = vmul.f32 %v2515_v52, %v2515_v52  ;;  %v2519_v59 = vadd.f32 %v2518_v44, %v1813_v17  ;;  %v1900_v1 = vsel %vm520_vm1, %v2513_v62, 0.0 }
 0x17c   : > { %v1897_v41 = vadd.f32 %v1896_v15, %v1895_v20  ;;  %v1950_v42 = vadd.f32 %v1949_v35, %v1948_v51  ;;  %1880 = vst.msk [vmem:[%s3443_s30 + $0x38] sm:$0xff] %vm520_vm1, %v2517_v46  ;;  %v1935_v61 = vmul.f32 %v2517_v46, %v2517_v46  ;;  %v1902_v5 = vsel %vm520_vm1, %v2517_v46, 0.0 }
 0x17d   : > { %v1951_v47 = vsel %vm520_vm1, %v1932_v37, 0.0  ;;  %1878 = vst.msk [vmem:[%s3443_s30 + $0x28] sm:$0xff] %vm520_vm1, %v2519_v59  ;;  %v1898_v18 = vsel %vm520_vm1, %v2519_v59, 0.0  ;;  %v1933_v13 = vmul.f32 %v2519_v59, %v2519_v59  ;;  %v1955_v60 = vsel %vm520_vm1, %v1934_v53, 0.0 }
 0x17e   : > { %v1952_v28 = vadd.f32 %v1951_v47, %v1950_v42  ;;  %v1899_v21 = vadd.f32 %v1898_v18, %v1897_v41  ;;  %v1957_v8 = vsel %vm520_vm1, %v1935_v61, 0.0  ;;  %v2528_v62 = vadd.f32 %v3467_v30, %v477_v48 }
 0x17f   : > { %v2496_v3 = vpop.f32.mrb[8].mxu0  ;;  %v1953_v23 = vsel %vm520_vm1, %v1933_v13, 0.0  ;;  %v2530_v6 = vadd.f32 %v3472_v19, %v475_v4  ;;  %v2532_v56 = vadd.f32 %v3474_v57, %v478_v58  ;;  %v2534_v30 = vadd.f32 %v3478_v7, %v476_v22 }
 0x180   : > { %v1901_v38 = vadd.f32 %v1900_v1, %v1899_v21  ;;  %v2521_v11 = vadd.f32 %v2520_v43, %v2496_v3  ;;  %v1826_v0 = vpop.f32.mrb[9].mxu0  ;;  %v1954_v24 = vadd.f32 %v1953_v23, %v1952_v28 }
 0x181   : > { %v2523_v63 = vadd.f32 %v2522_v34, %v1826_v0  ;;  %v2497_v2 = vpop.f32.mrb[10].mxu0 }
 0x182   : > { %1883 = vst.msk [vmem:[%s3443_s30 + $0x50] sm:$0xff] %vm520_vm1, %v2521_v11  ;;  %v1903_v39 = vadd.f32 %v1902_v5, %v1901_v38  ;;  %v2525_v25 = vadd.f32 %v2524_v12, %v2497_v2  ;;  %v1829_v32 = vpop.f32.mrb[11].mxu0  ;;  %v1956_v40 = vadd.f32 %v1955_v60, %v1954_v24  ;;  %v1938_v31 = vmul.f32 %v2521_v11, %v2521_v11 }
 0x183   : > { %1881 = vst.msk [vmem:[%s3443_s30 + $0x40] sm:$0xff] %vm520_vm1, %v2523_v63  ;;  %v1904_v50 = vsel %vm520_vm1, %v2523_v63, 0.0  ;;  %v1936_v9 = vmul.f32 %v2523_v63, %v2523_v63  ;;  %v2527_v55 = vadd.f32 %v2526_v10, %v1829_v32  ;;  %v1908_v33 = vsel %vm520_vm1, %v2521_v11, 0.0 }
 0x184   : > { %v1905_v26 = vadd.f32 %v1904_v50, %v1903_v39  ;;  %1884 = vst.msk [vmem:[%s3443_s30 + $0x58] sm:$0xff] %vm520_vm1, %v2525_v25  ;;  %v1958_v16 = vadd.f32 %v1957_v8, %v1956_v40  ;;  %v1939_v35 = vmul.f32 %v2525_v25, %v2525_v25  ;;  %v1910_v17 = vsel %vm520_vm1, %v2525_v25, 0.0 }
 0x185   : > { %v1959_v49 = vsel %vm520_vm1, %v1936_v9, 0.0  ;;  %1882 = vst.msk [vmem:[%s3443_s30 + $0x48] sm:$0xff] %vm520_vm1, %v2527_v55  ;;  %v1906_v27 = vsel %vm520_vm1, %v2527_v55, 0.0  ;;  %v1937_v29 = vmul.f32 %v2527_v55, %v2527_v55  ;;  %v1963_v46 = vsel %vm520_vm1, %v1938_v31, 0.0 }
 0x186   : > { %v1907_v44 = vadd.f32 %v1906_v27, %v1905_v26  ;;  %v1960_v14 = vadd.f32 %v1959_v49, %v1958_v16  ;;  %v1965_v45 = vsel %vm520_vm1, %v1939_v35, 0.0 }
 0x187   : > { %v1961_v36 = vsel %vm520_vm1, %v1937_v29, 0.0  ;;  %v2500_v52 = vpop.f32.mrb[12].mxu0 }
 0x188   : > { %v1909_v51 = vadd.f32 %v1908_v33, %v1907_v44  ;;  %v2529_v54 = vadd.f32 %v2528_v62, %v2500_v52  ;;  %v1842_v20 = vpop.f32.mrb[13].mxu0  ;;  %v1962_v19 = vadd.f32 %v1961_v36, %v1960_v14 }
 0x189   : > { %v2531_v15 = vadd.f32 %v2530_v6, %v1842_v20  ;;  %v2501_v37 = vpop.f32.mrb[14].mxu0 }
 0x18a   : > { %1887 = vst.msk [vmem:[%s3443_s30 + $0x70] sm:$0xff] %vm520_vm1, %v2529_v54  ;;  %v1911_v59 = vadd.f32 %v1910_v17, %v1909_v51  ;;  %v2533_v57 = vadd.f32 %v2532_v56, %v2501_v37  ;;  %v1845_v41 = vpop.f32.mrb[15].mxu0  ;;  %v1964_v42 = vadd.f32 %v1963_v46, %v1962_v19  ;;  %v1942_v34 = vmul.f32 %v2529_v54, %v2529_v54 }
 0x18b   : > { %1885 = vst.msk [vmem:[%s3443_s30 + $0x60] sm:$0xff] %vm520_vm1, %v2531_v15  ;;  %v1912_v7 = vsel %vm520_vm1, %v2531_v15, 0.0  ;;  %v1940_v43 = vmul.f32 %v2531_v15, %v2531_v15  ;;  %v2535_v47 = vadd.f32 %v2534_v30, %v1845_v41  ;;  %v1916_v12 = vsel %vm520_vm1, %v2529_v54, 0.0 }
 0x18c   : > { %v1913_v18 = vadd.f32 %v1912_v7, %v1911_v59  ;;  %1888 = vst.msk [vmem:[%s3443_s30 + $0x78] sm:$0xff] %vm520_vm1, %v2533_v57  ;;  %v1966_v53 = vadd.f32 %v1965_v45, %v1964_v42  ;;  %v1943_v61 = vmul.f32 %v2533_v57, %v2533_v57  ;;  %v1918_v23 = vsel %vm520_vm1, %v2533_v57, 0.0 }
 0x18d   : > { %v1967_v28 = vsel %vm520_vm1, %v1940_v43, 0.0  ;;  %1886 = vst.msk [vmem:[%s3443_s30 + $0x68] sm:$0xff] %vm520_vm1, %v2535_v47  ;;  %v1914_v21 = vsel %vm520_vm1, %v2535_v47, 0.0  ;;  %v1941_v13 = vmul.f32 %v2535_v47, %v2535_v47  ;;  %v1971_v0 = vsel %vm520_vm1, %v1942_v34, 0.0 }
 0x18e   : > { %v1915_v1 = vadd.f32 %v1914_v21, %v1913_v18  ;;  %v1968_v48 = vadd.f32 %v1967_v28, %v1966_v53  ;;  %v1973_v24 = vsel %vm520_vm1, %v1943_v61, 0.0 }
 0x18f   : > { %v1969_v3 = vsel %vm520_vm1, %v1941_v13, 0.0 }
 0x190   : > { %v1917_v38 = vadd.f32 %v1916_v12, %v1915_v1  ;;  %v1970_v11 = vadd.f32 %v1969_v3, %v1968_v48 }
 0x192   : > { %v1919_v10 = vadd.f32 %v1918_v23, %v1917_v38  ;;  %v1972_v5 = vadd.f32 %v1971_v0, %v1970_v11 }
 0x194   : > { %v1920_v63 = vrot.slane %v1919_v10, 4  ;;  %v1974_v2 = vadd.f32 %v1973_v24, %v1972_v5 }
 0x196   : > { %v1921_v60 = vadd.f32 %v1920_v63, %v1919_v10  ;;  %v1975_v4 = vrot.slane %v1974_v2, 4 }
 0x198   : > { %v1922_v39 = vrot.slane %v1921_v60, 2  ;;  %v1976_v25 = vadd.f32 %v1975_v4, %v1974_v2 }
 0x19a   : > { %v1923_v32 = vadd.f32 %v1922_v39, %v1921_v60  ;;  %v1977_v40 = vrot.slane %v1976_v25, 2 }
 0x19c   : > { %v1924_v50 = vrot.slane %v1923_v32, 1  ;;  %v1978_v9 = vadd.f32 %v1977_v40, %v1976_v25 }
 0x19e   : > { %v1925_v55 = vadd.f32 %v1924_v50, %v1923_v32  ;;  %v1979_v8 = vrot.slane %v1978_v9, 1 }
 0x1a0   : > { %1927 = vst.msk [vmem:[%s216_s9] sm:$0x1] %vm1926_vm8, %v1925_v55  ;;  %v1980_v58 = vadd.f32 %v1979_v8, %v1978_v9 }
 0x1a2   : > { %1981 = vst.msk [vmem:[%s216_s9 + $0x1] sm:$0x1] %vm1926_vm8, %v1980_v58 }
 0x1a3 PF: > { %s14_s16 = sadd.s32 1, %s2747_s16   ;;  %s3583_s12 = smov %s2739_s14 }
 0x1a4   : > { %p11_p8 = scmp.ge.s32.totalorder %s14_s16, 6   ;;  %s3584_s13 = smov %s2743_s15 }
 0x1a5   : > { %s3585_s14 = smov %s3588_s17  ;;  %s3586_s15 = smov %s3592_s18 }
 0x1a6   :  { %13 = sbr.rel (!%p11_p8) target bundleno = 3 (0x3), region = 79 }

</bundles_post_ra>
